<compile_context>
chip_gen: v5e
topology: v5e:2x2
jax: 0.10.0
libtpu: 0.0.40
codegen_flags: <defaults>
</compile_context>

<pallas_src>
import functools

import jax
import jax.numpy as jnp
from jax.experimental import pallas as pl
from jax.experimental.pallas import tpu as pltpu

LANE = 128


def _round_up(n, m):
    return (n + m - 1) // m * m


def vae_kernel(x_ref, eps_ref, w_ref, b_ref, out_ref, xpad_ref, epad_ref):
    """One batch tile of the VAE forward.

    x_ref    : (TB, in_dim)   f32  raw input tile (narrow, no HBM padding)
    eps_ref  : (TB, lat_dim)  f32  raw noise tile (narrow, no HBM padding)
    w_ref    : (P, 5P)        bf16 [ Wq1 | Wq_mu | Wq_logsig2 | Wp1 | Wp2 ]
    b_ref    : (1, 5P)        f32  [ bq1 | bq_mu | bq_logsig2 | bp1 | bp2 ]
    out_ref  : (1, 2, P)      f32  row 0 = per-lane l1 partials, row 1 = l2 partials
    xpad_ref : (TB, P)        f32  VMEM scratch (lane-padded x)
    epad_ref : (TB, P)        f32  VMEM scratch (lane-padded eps)
    """
    f32, bf16 = jnp.float32, jnp.bfloat16
    p = w_ref.shape[0]
    in_dim = x_ref.shape[1]
    lat_dim = eps_ref.shape[1]

    # ---- zero-pad the narrow streams to P lanes inside VMEM (exact padding).
    # Unconditional zero-fill so correctness is independent of how the grid is
    # sharded across TensorCores (megacore cores don't all see program_id 0).
    xpad_ref[...] = jnp.zeros_like(xpad_ref)
    epad_ref[...] = jnp.zeros_like(epad_ref)
    xpad_ref[:, 0:in_dim] = x_ref[...]
    epad_ref[:, 0:lat_dim] = eps_ref[...]
    x = xpad_ref[...]
    eps = epad_ref[...]

    # ---- encoder: h = ReLU(x @ Wq1 + bq1) ----
    h = jnp.dot(x.astype(bf16), w_ref[:, 0:p], preferred_element_type=f32)
    h = jnp.maximum(h + b_ref[:, 0:p], 0.0)

    # ---- fused mu / log_sigma2 heads: a single MXU pass over 2P lanes ----
    heads = jnp.dot(h.astype(bf16), w_ref[:, p:3 * p], preferred_element_type=f32)
    heads = heads + b_ref[:, p:3 * p]
    mu_z = heads[:, 0:p]
    log_sigma2_z = heads[:, p:2 * p]

    # ---- reparameterization (f32 elementwise) ----
    sigma_z = jnp.exp(0.5 * log_sigma2_z)
    z = mu_z + sigma_z * eps            # padded lanes: 0 + 1 * 0 = 0 exactly

    # ---- decoder: mu_x = ReLU(z @ Wp1 + bp1) @ Wp2 + bp2 ----
    hp = jnp.dot(z.astype(bf16), w_ref[:, 3 * p:4 * p], preferred_element_type=f32)
    hp = jnp.maximum(hp + b_ref[:, 3 * p:4 * p], 0.0)
    mu_x = jnp.dot(hp.astype(bf16), w_ref[:, 4 * p:5 * p], preferred_element_type=f32)
    mu_x = mu_x + b_ref[:, 4 * p:5 * p]  # padded lanes are exactly 0

    # ---- per-lane partial ELBO terms (reduce over the batch tile only) ----
    l1_lane = -0.5 * jnp.sum((x - mu_x) ** 2, axis=0, keepdims=True)            # (1, P)
    l2_lane = 0.5 * jnp.sum(1.0 + log_sigma2_z - mu_z * mu_z - sigma_z * sigma_z,
                            axis=0, keepdims=True)                              # (1, P)

    # Single unmasked lane-dense store of the tiny (2, P) partials slab.
    row = jax.lax.broadcasted_iota(jnp.int32, (2, p), 0)
    slab = jnp.where(row == 0, l1_lane, l2_lane)                                 # (2, P)
    out_ref[...] = slab.reshape(1, 2, p)


def vae_forward(x, eps, w_packed, b_packed, *, p, tb=256):
    """Runs the full VAE forward; returns (elbo, l1, l2) scalars."""
    batch, in_dim = x.shape
    lat_dim = eps.shape[1]
    assert tb % 8 == 0 and batch % tb == 0, \
        "batch must be a multiple of the 8-aligned batch tile tb"
    nb = batch // tb

    partials = pl.pallas_call(
        vae_kernel,
        out_shape=jax.ShapeDtypeStruct((nb, 2, p), jnp.float32),
        grid=(nb,),
        in_specs=[
            pl.BlockSpec((tb, in_dim), lambda b: (b, 0)),    # narrow x tile
            pl.BlockSpec((tb, lat_dim), lambda b: (b, 0)),   # narrow eps tile
            pl.BlockSpec((p, 5 * p), lambda b: (0, 0)),      # packed weights (VMEM-resident)
            pl.BlockSpec((1, 5 * p), lambda b: (0, 0)),      # packed biases  (VMEM-resident)
        ],
        out_specs=pl.BlockSpec((1, 2, p), lambda b: (b, 0, 0)),
        scratch_shapes=[
            pltpu.VMEM((tb, p), jnp.float32),                # lane-padded x scratch
            pltpu.VMEM((tb, p), jnp.float32),                # lane-padded eps scratch
        ],
        compiler_params=pltpu.CompilerParams(
            dimension_semantics=("parallel",)),              # batch axis -> megacore on v7x
    )(x.astype(jnp.float32), eps.astype(jnp.float32), w_packed, b_packed)

    l1 = jnp.sum(partials[:, 0, :])
    l2 = jnp.sum(partials[:, 1, :])
    return l1 + l2, l1, l2


def init_linear(key, in_dim, out_dim):
    """PyTorch nn.Linear default init; weight stored pre-transposed as (in, out)."""
    kw, kb = jax.random.split(key)
    bound = 1.0 / jnp.sqrt(in_dim)
    w = jax.random.uniform(kw, (in_dim, out_dim), jnp.float32, -bound, bound)
    b = jax.random.uniform(kb, (1, out_dim), jnp.float32, -bound, bound)
    return w, b


def make_params(key, input_dim, hidden_dim, latent_dim):
    keys = jax.random.split(key, 5)
    wq1, bq1 = init_linear(keys[0], input_dim, hidden_dim)
    wqmu, bqmu = init_linear(keys[1], hidden_dim, latent_dim)
    wqls, bqls = init_linear(keys[2], hidden_dim, latent_dim)
    wp1, bp1 = init_linear(keys[3], latent_dim, hidden_dim)
    wp2, bp2 = init_linear(keys[4], hidden_dim, input_dim)
    return dict(wq1=wq1, bq1=bq1, wqmu=wqmu, bqmu=bqmu, wqls=wqls, bqls=bqls,
                wp1=wp1, bp1=bp1, wp2=wp2, bp2=bp2)


def pack_params(params, input_dim, hidden_dim, latent_dim):
    """Zero-pad every feature dim to a common lane-dense width P and concatenate
    all weights (bf16) / biases (f32) along the lane axis -> 2 operands total.
    Zero padding is load-bearing for exactness of the padded-lane ELBO terms."""
    p = _round_up(max(input_dim, hidden_dim, latent_dim), LANE)

    def pad_w(w):
        return jnp.zeros((p, p), jnp.float32).at[:w.shape[0], :w.shape[1]].set(w)

    def pad_b(b):
        return jnp.zeros((1, p), jnp.float32).at[:, :b.shape[1]].set(b)

    w_packed = jnp.concatenate(
        [pad_w(params["wq1"]),
         pad_w(params["wqmu"]), pad_w(params["wqls"]),   # fused encoder heads (lanes P..3P)
         pad_w(params["wp1"]),
         pad_w(params["wp2"])], axis=1).astype(jnp.bfloat16)          # (P, 5P) bf16
    b_packed = jnp.concatenate(
        [pad_b(params["bq1"]),
         pad_b(params["bqmu"]), pad_b(params["bqls"]),
         pad_b(params["bp1"]),
         pad_b(params["bp2"])], axis=1)                               # (1, 5P) f32
    return w_packed, b_packed, p


def vae_reference(x, eps, params):
    """Pure-JAX reference with the same numerics as the kernel (bf16 matmul
    operands, f32 accumulation / elementwise), mirroring the PyTorch forward."""
    bf16, f32 = jnp.bfloat16, jnp.float32

    def mm(a, w):
        return jnp.dot(a.astype(bf16), w.astype(bf16), preferred_element_type=f32)

    h = jnp.maximum(mm(x, params["wq1"]) + params["bq1"], 0.0)
    mu_z = mm(h, params["wqmu"]) + params["bqmu"]
    log_s2 = mm(h, params["wqls"]) + params["bqls"]
    sigma = jnp.exp(0.5 * log_s2)
    z = mu_z + sigma * eps
    hp = jnp.maximum(mm(z, params["wp1"]) + params["bp1"], 0.0)
    mu_x = mm(hp, params["wp2"]) + params["bp2"]
    l1 = -0.5 * jnp.sum((x - mu_x) ** 2)
    l2 = 0.5 * jnp.sum(1.0 + log_s2 - mu_z ** 2 - sigma ** 2)
    return l1 + l2, l1, l2


if __name__ == "__main__":
    # VAE-consistent feature shapes (input_dim=16, hidden_dim=32, latent_dim=8).
    # batch=512 with TB=256 gives 2 grid steps -> both v7x TensorCores busy,
    # MXU M dimension filled, per-step overhead amortized.
    B, INPUT_DIM, HIDDEN_DIM, LATENT_DIM = 512, 16, 32, 8
    TB = 256

    key = jax.random.PRNGKey(0)
    k_params, k_x, k_eps = jax.random.split(key, 3)

    params = make_params(k_params, INPUT_DIM, HIDDEN_DIM, LATENT_DIM)
    x = jax.random.normal(k_x, (B, INPUT_DIM), jnp.float32)
    # torch.randn_like noise, drawn outside the kernel for deterministic checking.
    eps = jax.random.normal(k_eps, (B, LATENT_DIM), jnp.float32)

    w_packed, b_packed, P = pack_params(params, INPUT_DIM, HIDDEN_DIM, LATENT_DIM)

    fwd = jax.jit(functools.partial(vae_forward, p=P, tb=TB))
    elbo, l1, l2 = fwd(x, eps, w_packed, b_packed)
    jax.block_until_ready((elbo, l1, l2))

    # Cross-check against the pure-JAX reference (matching bf16-matmul numerics).
    elbo_ref, l1_ref, l2_ref = vae_reference(x, eps, params)
    assert jnp.allclose(l1, l1_ref, rtol=2e-3, atol=1e-2), (l1, l1_ref)
    assert jnp.allclose(l2, l2_ref, rtol=2e-3, atol=1e-2), (l2, l2_ref)
    assert jnp.allclose(elbo, elbo_ref, rtol=2e-3, atol=1e-2), (elbo, elbo_ref)

    print("KERNEL_OK")
</pallas_src>

<mosaic_0001>
module attributes {stable_mosaic.version = 11 : i64} {
  func.func @vae_kernel(%arg0: i32, %arg1: memref<256x16xf32, #tpu.memory_space<vmem>>, %arg2: memref<256x8xf32, #tpu.memory_space<vmem>>, %arg3: memref<128x640xbf16, #tpu.memory_space<vmem>>, %arg4: memref<1x640xf32, #tpu.memory_space<vmem>>, %arg5: memref<1x2x128xf32, #tpu.memory_space<vmem>>, %arg6: memref<256x128xf32, #tpu.memory_space<vmem>>, %arg7: memref<256x128xf32, #tpu.memory_space<vmem>>) attributes {dimension_semantics = [#tpu.dimension_semantics<parallel>], iteration_bounds = array<i64: 2>, scalar_prefetch = 0 : i64, scratch_operands = 2 : i64, tpu.core_type = #tpu.core_type<tc>, window_params = [{transform_indices = @transform_0, window_bounds = array<i64: 256, 16>}, {transform_indices = @transform_1, window_bounds = array<i64: 256, 8>}, {pipeline_mode = #tpu.pipeline_mode<synchronous>, transform_indices = @transform_2, window_bounds = array<i64: 128, 640>}, {pipeline_mode = #tpu.pipeline_mode<synchronous>, transform_indices = @transform_3, window_bounds = array<i64: 1, 640>}, {transform_indices = @transform_4, window_bounds = array<i64: 1, 2, 128>}]} {
    %cst = arith.constant 0.000000e+00 : f32
    %0 = vector.broadcast %cst : f32 to vector<256x128xf32>
    %c0 = arith.constant 0 : index
    %c0_0 = arith.constant 0 : index
    %1 = vector.load %arg6[%c0, %c0_0] : memref<256x128xf32, #tpu.memory_space<vmem>>, vector<256x128xf32>
    tpu.vector_store %arg6[%c0, %c0_0], %0 {strides = array<i32>} : memref<256x128xf32, #tpu.memory_space<vmem>>, vector<256x128xf32>,
    %cst_1 = arith.constant 0.000000e+00 : f32
    %2 = vector.broadcast %cst_1 : f32 to vector<256x128xf32>
    %c0_2 = arith.constant 0 : index
    %c0_3 = arith.constant 0 : index
    %3 = vector.load %arg7[%c0_2, %c0_3] : memref<256x128xf32, #tpu.memory_space<vmem>>, vector<256x128xf32>
    tpu.vector_store %arg7[%c0_2, %c0_3], %2 {strides = array<i32>} : memref<256x128xf32, #tpu.memory_space<vmem>>, vector<256x128xf32>,
    %c0_4 = arith.constant 0 : index
    %c0_5 = arith.constant 0 : index
    %4 = vector.load %arg1[%c0_4, %c0_5] : memref<256x16xf32, #tpu.memory_space<vmem>>, vector<256x16xf32>
    %c0_6 = arith.constant 0 : index
    %c0_7 = arith.constant 0 : index
    %5 = vector.load %arg6[%c0_6, %c0_7] : memref<256x128xf32, #tpu.memory_space<vmem>>, vector<256x16xf32>
    tpu.vector_store %arg6[%c0_6, %c0_7], %4 {strides = array<i32>} : memref<256x128xf32, #tpu.memory_space<vmem>>, vector<256x16xf32>,
    %c0_8 = arith.constant 0 : index
    %c0_9 = arith.constant 0 : index
    %6 = vector.load %arg2[%c0_8, %c0_9] : memref<256x8xf32, #tpu.memory_space<vmem>>, vector<256x8xf32>
    %c0_10 = arith.constant 0 : index
    %c0_11 = arith.constant 0 : index
    %7 = vector.load %arg7[%c0_10, %c0_11] : memref<256x128xf32, #tpu.memory_space<vmem>>, vector<256x8xf32>
    tpu.vector_store %arg7[%c0_10, %c0_11], %6 {strides = array<i32>} : memref<256x128xf32, #tpu.memory_space<vmem>>, vector<256x8xf32>,
    %c0_12 = arith.constant 0 : index
    %c0_13 = arith.constant 0 : index
    %8 = vector.load %arg6[%c0_12, %c0_13] : memref<256x128xf32, #tpu.memory_space<vmem>>, vector<256x128xf32>
    %c0_14 = arith.constant 0 : index
    %c0_15 = arith.constant 0 : index
    %9 = vector.load %arg7[%c0_14, %c0_15] : memref<256x128xf32, #tpu.memory_space<vmem>>, vector<256x128xf32>
    %10 = arith.truncf %8 : vector<256x128xf32> to vector<256x128xbf16>
    %c0_16 = arith.constant 0 : index
    %c0_17 = arith.constant 0 : index
    %11 = vector.load %arg3[%c0_16, %c0_17] : memref<128x640xbf16, #tpu.memory_space<vmem>>, vector<128x128xbf16>
    %cst_18 = arith.constant dense<0.000000e+00> : vector<256x128xf32>
    %12 = tpu.matmul %10, %11, %cst_18 {dimension_numbers = #tpu.dot_dimension_numbers<[1], [0], [0], [1], [0, 0, 1, 1], [], []>} : vector<256x128xbf16>, vector<128x128xbf16>, vector<256x128xf32> -> vector<256x128xf32>
    %c0_19 = arith.constant 0 : index
    %c0_20 = arith.constant 0 : index
    %13 = vector.load %arg4[%c0_19, %c0_20] : memref<1x640xf32, #tpu.memory_space<vmem>>, vector<1x128xf32>
    %14 = vector.broadcast %13 : vector<1x128xf32> to vector<256x128xf32>
    %15 = arith.addf %12, %14 : vector<256x128xf32>
    %cst_21 = arith.constant 0.000000e+00 : f32
    %16 = vector.broadcast %cst_21 : f32 to vector<256x128xf32>
    %17 = arith.maximumf %15, %16 : vector<256x128xf32>
    %18 = arith.truncf %17 : vector<256x128xf32> to vector<256x128xbf16>
    %c0_22 = arith.constant 0 : index
    %c128 = arith.constant 128 : index
    %19 = vector.load %arg3[%c0_22, %c128] : memref<128x640xbf16, #tpu.memory_space<vmem>>, vector<128x256xbf16>
    %cst_23 = arith.constant dense<0.000000e+00> : vector<256x256xf32>
    %20 = tpu.matmul %18, %19, %cst_23 {dimension_numbers = #tpu.dot_dimension_numbers<[1], [0], [0], [1], [0, 0, 1, 1], [], []>} : vector<256x128xbf16>, vector<128x256xbf16>, vector<256x256xf32> -> vector<256x256xf32>
    %c0_24 = arith.constant 0 : index
    %c128_25 = arith.constant 128 : index
    %21 = vector.load %arg4[%c0_24, %c128_25] : memref<1x640xf32, #tpu.memory_space<vmem>>, vector<1x256xf32>
    %22 = vector.broadcast %21 : vector<1x256xf32> to vector<256x256xf32>
    %23 = arith.addf %20, %22 : vector<256x256xf32>
    %24 = vector.extract_strided_slice %23 {offsets = [0, 0], sizes = [256, 128], strides = [1, 1]} : vector<256x256xf32> to vector<256x128xf32>
    %25 = vector.extract_strided_slice %23 {offsets = [0, 128], sizes = [256, 128], strides = [1, 1]} : vector<256x256xf32> to vector<256x128xf32>
    %cst_26 = arith.constant 5.000000e-01 : f32
    %26 = vector.broadcast %cst_26 : f32 to vector<256x128xf32>
    %27 = arith.mulf %26, %25 : vector<256x128xf32>
    %28 = math.exp %27 : vector<256x128xf32>
    %29 = arith.mulf %28, %9 : vector<256x128xf32>
    %30 = arith.addf %24, %29 : vector<256x128xf32>
    %31 = arith.truncf %30 : vector<256x128xf32> to vector<256x128xbf16>
    %c0_27 = arith.constant 0 : index
    %c384 = arith.constant 384 : index
    %32 = vector.load %arg3[%c0_27, %c384] : memref<128x640xbf16, #tpu.memory_space<vmem>>, vector<128x128xbf16>
    %cst_28 = arith.constant dense<0.000000e+00> : vector<256x128xf32>
    %33 = tpu.matmul %31, %32, %cst_28 {dimension_numbers = #tpu.dot_dimension_numbers<[1], [0], [0], [1], [0, 0, 1, 1], [], []>} : vector<256x128xbf16>, vector<128x128xbf16>, vector<256x128xf32> -> vector<256x128xf32>
    %c0_29 = arith.constant 0 : index
    %c384_30 = arith.constant 384 : index
    %34 = vector.load %arg4[%c0_29, %c384_30] : memref<1x640xf32, #tpu.memory_space<vmem>>, vector<1x128xf32>
    %35 = vector.broadcast %34 : vector<1x128xf32> to vector<256x128xf32>
    %36 = arith.addf %33, %35 : vector<256x128xf32>
    %cst_31 = arith.constant 0.000000e+00 : f32
    %37 = vector.broadcast %cst_31 : f32 to vector<256x128xf32>
    %38 = arith.maximumf %36, %37 : vector<256x128xf32>
    %39 = arith.truncf %38 : vector<256x128xf32> to vector<256x128xbf16>
    %c0_32 = arith.constant 0 : index
    %c512 = arith.constant 512 : index
    %40 = vector.load %arg3[%c0_32, %c512] : memref<128x640xbf16, #tpu.memory_space<vmem>>, vector<128x128xbf16>
    %cst_33 = arith.constant dense<0.000000e+00> : vector<256x128xf32>
    %41 = tpu.matmul %39, %40, %cst_33 {dimension_numbers = #tpu.dot_dimension_numbers<[1], [0], [0], [1], [0, 0, 1, 1], [], []>} : vector<256x128xbf16>, vector<128x128xbf16>, vector<256x128xf32> -> vector<256x128xf32>
    %c0_34 = arith.constant 0 : index
    %c512_35 = arith.constant 512 : index
    %42 = vector.load %arg4[%c0_34, %c512_35] : memref<1x640xf32, #tpu.memory_space<vmem>>, vector<1x128xf32>
    %43 = vector.broadcast %42 : vector<1x128xf32> to vector<256x128xf32>
    %44 = arith.addf %41, %43 : vector<256x128xf32>
    %45 = arith.subf %8, %44 : vector<256x128xf32>
    %46 = arith.mulf %45, %45 : vector<256x128xf32>
    %cst_36 = arith.constant dense<0.000000e+00> : vector<128xf32>
    %47 = vector.multi_reduction <add>, %46, %cst_36 [0] : vector<256x128xf32> to vector<128xf32>
    %48 = vector.shape_cast %47 : vector<128xf32> to vector<1x128xf32>
    %cst_37 = arith.constant -5.000000e-01 : f32
    %49 = vector.broadcast %cst_37 : f32 to vector<1x128xf32>
    %50 = arith.mulf %49, %48 : vector<1x128xf32>
    %cst_38 = arith.constant 1.000000e+00 : f32
    %51 = vector.broadcast %cst_38 : f32 to vector<256x128xf32>
    %52 = arith.addf %51, %25 : vector<256x128xf32>
    %53 = arith.mulf %24, %24 : vector<256x128xf32>
    %54 = arith.subf %52, %53 : vector<256x128xf32>
    %55 = arith.mulf %28, %28 : vector<256x128xf32>
    %56 = arith.subf %54, %55 : vector<256x128xf32>
    %cst_39 = arith.constant dense<0.000000e+00> : vector<128xf32>
    %57 = vector.multi_reduction <add>, %56, %cst_39 [0] : vector<256x128xf32> to vector<128xf32>
    %58 = vector.shape_cast %57 : vector<128xf32> to vector<1x128xf32>
    %cst_40 = arith.constant 5.000000e-01 : f32
    %59 = vector.broadcast %cst_40 : f32 to vector<1x128xf32>
    %60 = arith.mulf %59, %58 : vector<1x128xf32>
    %61 = tpu.iota {dimensions = array<i32: 0>} : vector<2x128xi32>
    %c0_i32 = arith.constant 0 : i32
    %62 = vector.broadcast %c0_i32 : i32 to vector<2x128xi32>
    %63 = arith.cmpi eq, %61, %62 : vector<2x128xi32>
    %64 = vector.shape_cast %50 : vector<1x128xf32> to vector<1x128xf32>
    %65 = vector.broadcast %64 : vector<1x128xf32> to vector<2x128xf32>
    %66 = vector.shape_cast %60 : vector<1x128xf32> to vector<1x128xf32>
    %67 = vector.broadcast %66 : vector<1x128xf32> to vector<2x128xf32>
    %68 = arith.select %63, %65, %67 : vector<2x128xi1>, vector<2x128xf32>
    %69 = vector.shape_cast %68 : vector<2x128xf32> to vector<1x2x128xf32>
    %c0_41 = arith.constant 0 : index
    %c0_42 = arith.constant 0 : index
    %c0_43 = arith.constant 0 : index
    %70 = vector.load %arg5[%c0_41, %c0_42, %c0_43] : memref<1x2x128xf32, #tpu.memory_space<vmem>>, vector<1x2x128xf32>
    tpu.vector_store %arg5[%c0_41, %c0_42, %c0_43], %69 {strides = array<i32>} : memref<1x2x128xf32, #tpu.memory_space<vmem>>, vector<1x2x128xf32>,
    return
  }
  func.func @transform_0(%arg0: i32) -> (i32, i32) {
    %c0_i32 = arith.constant 0 : i32
    %c0_i32_0 = arith.constant 0 : i32
    return %arg0, %c0_i32 : i32, i32
  }
  func.func @transform_1(%arg0: i32) -> (i32, i32) {
    %c0_i32 = arith.constant 0 : i32
    %c0_i32_0 = arith.constant 0 : i32
    return %arg0, %c0_i32 : i32, i32
  }
  func.func @transform_2(%arg0: i32) -> (i32, i32) {
    %c0_i32 = arith.constant 0 : i32
    %c0_i32_0 = arith.constant 0 : i32
    %c0_i32_1 = arith.constant 0 : i32
    return %c0_i32, %c0_i32_0 : i32, i32
  }
  func.func @transform_3(%arg0: i32) -> (i32, i32) {
    %c0_i32 = arith.constant 0 : i32
    %c0_i32_0 = arith.constant 0 : i32
    %c0_i32_1 = arith.constant 0 : i32
    return %c0_i32, %c0_i32_0 : i32, i32
  }
  func.func @transform_4(%arg0: i32) -> (i32, i32, i32) {
    %c0_i32 = arith.constant 0 : i32
    %c0_i32_0 = arith.constant 0 : i32
    %c0_i32_1 = arith.constant 0 : i32
    return %arg0, %c0_i32, %c0_i32_0 : i32, i32, i32
  }
}

</mosaic_0001>

<bundles_post_ra>
// kernel: vae_forward.1
= control target key start
LH: loop header
LB: loop body
LE: loop exit
PB: predicated region body
PF: predicated region fallthrough
CT: control target
= control target key end

     0   :  { %s2266_s15 = smov 0   ;;  %s3013_s0 = inlined_call_operand.vmem [shape: f32[512,16], index: 0, kind: input, shape index: {}]   ;;  %s3014_s1 = inlined_call_operand.vmem [shape: f32[512,8], index: 1, kind: input, shape index: {}]   ;;  %s3015_s2 = inlined_call_operand.vmem [shape: bf16[128,640], index: 2, kind: input, shape index: {}]   ;;  %s3016_s3 = inlined_call_operand.vmem [shape: f32[1,640], index: 3, kind: input, shape index: {}]   ;;  %s3017_s4 = inlined_call_operand.vmem [shape: f32[2,2,128], index: 4, kind: output, shape index: {}]  }
   0x1 LB: > { %s2272_s16 = sadd.s32 4294967295, %s2238_s15   ;;  %p1891_p0 = scmp.ge.s32.totalorder %s2238_s15, 1  ;;  %s2238_s15 = sphi %s2266_s15, %s14_s15  }
   0x2   : > { %p174_p1 = scmp.lt.s32.totalorder %s2238_s15, 3 }
   0x4   : > { %p175_p2 = pnand %p1891_p0, %p174_p1 }
   0x5   : > { %s1892_s29 = sshll.u32 (!%p175_p2), %s2272_s16, 5  ;;  %p216_p4 = scmp.lt.s32.totalorder (!%p175_p2), %s2272_s16, 1 }
   0x6   : > { %178 = sbr.rel (%p175_p2) target bundleno = 918 (0x396), region = 36  ;;  %p205_p3 = scmp.lt.s32.totalorder (!%p175_p2), %s1892_s29, 63 }
   0xb   : > { %v1927_v0 = vld [vmem:[%s3015_s2 + $0x118] sm:$0xf]  ;;  %v2066_v1 = vld [vmem:[%s3015_s2 + $0x128] sm:$0xf0]  ;;  %v1923_v2 = vld [vmem:[%s3015_s2 + $0xf0] sm:$0xf] }
   0xc   : > { %v1928_v3 = vor.u32 %v2066_v1, %v1927_v0  ;;  %v2065_v4 = vld [vmem:[%s3015_s2 + $0x100] sm:$0xf0]  ;;  %v1919_v6 = vld [vmem:[%s3015_s2 + $0xc8] sm:$0xf]  ;;  %v2064_v7 = vld [vmem:[%s3015_s2 + $0xd8] sm:$0xf0] }
   0xd   : > { %v1924_v5 = vor.u32 %v2065_v4, %v1923_v2  ;;  %v2240_v8 = vmov 0.0   ;;  %v1920_v9 = vor.u32 %v2064_v7, %v1919_v6  ;;  %v1915_v10 = vld [vmem:[%s3015_s2 + $0xa0] sm:$0xf]  ;;  %v2063_v11 = vld [vmem:[%s3015_s2 + $0xb0] sm:$0xf0]  ;;  %s3019_s29 = smov (!%p205_p3, %s1892_s29), 63 }
   0xe   : > { %562 = vmatpush.bf16.msra.mxu0 %v1928_v3  ;;  %2099 = vmatpush.bf16.msra.mxu1 %v1928_v3  ;;  %220 = vst [vmem:[#allocation2] sm:$0xff] %v2240_v8  ;;  %s1893_s8 = sshll.u32 %s3019_s29, 3  ;;  %vm316_vm0 = vcmask 130048   ;;  %v1916_v12 = vor.u32 %v2063_v11, %v1915_v10  ;;  %v1911_v13 = vld [vmem:[%s3015_s2 + $0x78] sm:$0xf]  ;;  %vm381_vm1 = vcmask 64512  }
   0xf   : > { %2100 = vmatpush.bf16.msra.mxu2 %v1928_v3  ;;  %2101 = vmatpush.bf16.msra.mxu3 %v1928_v3  ;;  %221 = vst [vmem:[#allocation2 + $0x8] sm:$0xff] %v2240_v8  ;;  %s2317_s13 = scalar_lea.vmem %s3013_s0, %s1893_s8  ;;  %v2062_v14 = vld [vmem:[%s3015_s2 + $0x88] sm:$0xf0]  ;;  %v1907_v18 = vld [vmem:[%s3015_s2 + $0x50] sm:$0xf]  ;;  %s2644_s17 = scalar_lea.vmem %s3014_s1, %s1893_s8 }
  0x10   : > { %222 = vst [vmem:[#allocation2 + $0x10] sm:$0xff] %v2240_v8  ;;  %v284_v15 = vld [vmem:[%s2317_s13] sm:$0xff]  ;;  %v285_v16 = vld [vmem:[%s2317_s13 + $0x8] sm:$0xff]  ;;  %v1912_v17 = vor.u32 %v2062_v14, %v1911_v13  ;;  %v2060_v22 = vld [vmem:[%s3015_s2 + $0x38] sm:$0xf0]  ;;  %s3021_s16 = smov (!%p216_p4, %s2272_s16), 1 }
  0x11   : > { %223 = vst [vmem:[#allocation2 + $0x18] sm:$0xff] %v2240_v8  ;;  %v2061_v19 = vld [vmem:[%s3015_s2 + $0x60] sm:$0xf0]  ;;  %v1903_v21 = vld [vmem:[%s3015_s2 + $0x28] sm:$0xf]  ;;  %v286_v30 = vld [vmem:[%s2317_s13 + $0x10] sm:$0xff] }
  0x12   : > { %563 = vmatpush.bf16.msra.mxu0 %v1924_v5  ;;  %2102 = vmatpush.bf16.msra.mxu1 %v1924_v5  ;;  %224 = vst [vmem:[#allocation2 + $0x20] sm:$0xff] %v2240_v8  ;;  %v1908_v20 = vor.u32 %v2061_v19, %v1907_v18  ;;  %v1904_v23 = vor.u32 %v2060_v22, %v1903_v21  ;;  %v1899_v24 = vld [vmem:[%s3015_s2] sm:$0xf]  ;;  %v2059_v25 = vld [vmem:[%s3015_s2 + $0x10] sm:$0xf0]  ;;  %v287_v31 = vld [vmem:[%s2317_s13 + $0x18] sm:$0xff] }
  0x13   : > { %2103 = vmatpush.bf16.msra.mxu2 %v1924_v5  ;;  %2104 = vmatpush.bf16.msra.mxu3 %v1924_v5  ;;  %225 = vst [vmem:[#allocation2 + $0x28] sm:$0xff] %v2240_v8  ;;  %v1900_v26 = vor.u32 %v2059_v25, %v1899_v24  ;;  %v288_v32 = vld [vmem:[%s2317_s13 + $0x20] sm:$0xff]  ;;  %v289_v33 = vld [vmem:[%s2317_s13 + $0x28] sm:$0xff]  ;;  %v290_v34 = vld [vmem:[%s2317_s13 + $0x30] sm:$0xff]  ;;  %s1896_s14 = sshll.u32 %s3021_s16, 1 }
  0x14   : > { %226 = vst [vmem:[#allocation2 + $0x30] sm:$0xff] %v2240_v8  ;;  %v291_v35 = vld [vmem:[%s2317_s13 + $0x38] sm:$0xff]  ;;  %v292_v38 = vld [vmem:[%s2317_s13 + $0x40] sm:$0xff]  ;;  %v293_v39 = vld [vmem:[%s2317_s13 + $0x48] sm:$0xff]  ;;  %s219_s18 = scalar_lea.vmem %s3017_s4, %s1896_s14 }
  0x15   : > { %317 = vst.msk [vmem:[#allocation2] sm:$0xff] %vm316_vm0, %v284_v15  ;;  %v300_v41 = vld [vmem:[%s2317_s13 + $0x80] sm:$0xff]  ;;  %v301_v42 = vld [vmem:[%s2317_s13 + $0x88] sm:$0xff]  ;;  %v294_v43 = vld [vmem:[%s2317_s13 + $0x50] sm:$0xff] }
  0x16   : > { %564 = vmatpush.bf16.msra.mxu0 %v1920_v9  ;;  %2105 = vmatpush.bf16.msra.mxu1 %v1920_v9  ;;  %318 = vst.msk [vmem:[#allocation2 + $0x8] sm:$0xff] %vm316_vm0, %v285_v16  ;;  %v295_v44 = vld [vmem:[%s2317_s13 + $0x58] sm:$0xff]  ;;  %v2081_v45 = vld [vmem:[%s3015_s2 + $0x120] sm:$0xf]  ;;  %v1989_v46 = vld [vmem:[%s3015_s2 + $0x130] sm:$0xf0] }
  0x17   : > { %2106 = vmatpush.bf16.msra.mxu2 %v1920_v9  ;;  %2107 = vmatpush.bf16.msra.mxu3 %v1920_v9  ;;  %227 = vst [vmem:[#allocation2 + $0x38] sm:$0xff] %v2240_v8  ;;  %v302_v47 = vld [vmem:[%s2317_s13 + $0x90] sm:$0xff]  ;;  %v1992_v48 = vor.u32 %v2081_v45, %v1989_v46  ;;  %v303_v49 = vld [vmem:[%s2317_s13 + $0x98] sm:$0xff]  ;;  %v1981_v51 = vld [vmem:[%s3015_s2 + $0x108] sm:$0xf0] }
  0x18   : > { %228 = vst [vmem:[#allocation2 + $0x40] sm:$0xff] %v2240_v8  ;;  %v2079_v50 = vld [vmem:[%s3015_s2 + $0xf8] sm:$0xf]  ;;  %v296_v52 = vld [vmem:[%s2317_s13 + $0x60] sm:$0xff]  ;;  %v297_v55 = vld [vmem:[%s2317_s13 + $0x68] sm:$0xff] }
  0x19   : > { %229 = vst [vmem:[#allocation2 + $0x48] sm:$0xff] %v2240_v8  ;;  %v1984_v54 = vor.u32 %v2079_v50, %v1981_v51  ;;  %v2077_v62 = vld [vmem:[%s3015_s2 + $0xd0] sm:$0xf]  ;;  %v1973_v63 = vld [vmem:[%s3015_s2 + $0xe0] sm:$0xf0]  ;;  %v305_v6 = vld [vmem:[%s2317_s13 + $0xa8] sm:$0xff] }
  0x1a   : > { %565 = vmatpush.bf16.msra.mxu0 %v1916_v12  ;;  %2108 = vmatpush.bf16.msra.mxu1 %v1916_v12  ;;  %230 = vst [vmem:[#allocation2 + $0x50] sm:$0xff] %v2240_v8  ;;  %v1976_v1 = vor.u32 %v2077_v62, %v1973_v63  ;;  %v1987_v2 = vld [vmem:[%s3015_s2 + $0x11c] sm:$0xf]  ;;  %v2082_v3 = vld [vmem:[%s3015_s2 + $0x12c] sm:$0xf0]  ;;  %v304_v5 = vld [vmem:[%s2317_s13 + $0xa0] sm:$0xff] }
  0x1b   : > { %2109 = vmatpush.bf16.msra.mxu2 %v1916_v12  ;;  %2110 = vmatpush.bf16.msra.mxu3 %v1916_v12  ;;  %231 = vst [vmem:[#allocation2 + $0x58] sm:$0xff] %v2240_v8  ;;  %v1988_v4 = vor.u32 %v2082_v3, %v1987_v2  ;;  %v1965_v9 = vld [vmem:[%s3015_s2 + $0xb8] sm:$0xf0]  ;;  %v1979_v11 = vld [vmem:[%s3015_s2 + $0xf4] sm:$0xf] }
  0x1c   : > { %232 = vst [vmem:[#allocation2 + $0x60] sm:$0xff] %v2240_v8  ;;  %v414_v27 = vld [vmem:[#allocation2] sm:$0xff]  ;;  %v2080_v12 = vld [vmem:[%s3015_s2 + $0x104] sm:$0xf0]  ;;  %v298_v14 = vld [vmem:[%s2317_s13 + $0x70] sm:$0xff] }
  0x1d   : > { %233 = vst [vmem:[#allocation2 + $0x68] sm:$0xff] %v2240_v8  ;;  %v415_v28 = vld [vmem:[#allocation2 + $0x8] sm:$0xff]  ;;  %v1980_v13 = vor.u32 %v2080_v12, %v1979_v11  ;;  %v299_v15 = vld [vmem:[%s2317_s13 + $0x78] sm:$0xff]  ;;  %v2073_v24 = vld [vmem:[%s3015_s2 + $0x80] sm:$0xf] }
  0x1e   : > { %566 = vmatpush.bf16.msra.mxu0 %v1912_v17  ;;  %2111 = vmatpush.bf16.msra.mxu1 %v1912_v17  ;;  %234 = vst [vmem:[#allocation2 + $0x70] sm:$0xff] %v2240_v8  ;;  %v478_v29 = vpack.c.bf16 %v415_v28, %v414_v27  ;;  %v1957_v25 = vld [vmem:[%s3015_s2 + $0x90] sm:$0xf0]  ;;  %v2078_v28 = vld [vmem:[%s3015_s2 + $0xdc] sm:$0xf0] }
  0x1f   : > { %2112 = vmatpush.bf16.msra.mxu2 %v1912_v17  ;;  %2113 = vmatpush.bf16.msra.mxu3 %v1912_v17  ;;  %235 = vst [vmem:[#allocation2 + $0x78] sm:$0xff] %v2240_v8  ;;  %v1960_v27 = vor.u32 %v2073_v24, %v1957_v25  ;;  %v1947_v50 = vld [vmem:[%s3015_s2 + $0x54] sm:$0xf]  ;;  %v1939_v62 = vld [vmem:[%s3015_s2 + $0x2c] sm:$0xf] }
  0x20   : > { %236 = vst [vmem:[#allocation2 + $0x80] sm:$0xff] %v2240_v8  ;;  %v2070_v63 = vld [vmem:[%s3015_s2 + $0x3c] sm:$0xf0]  ;;  %v2068_v3 = vld [vmem:[%s3015_s2 + $0x14] sm:$0xf0] }
  0x21   : > { %237 = vst [vmem:[#allocation2 + $0x88] sm:$0xff] %v2240_v8  ;;  %v1940_v2 = vor.u32 %v2070_v63, %v1939_v62 }
  0x22   : > { %567 = vmatpush.bf16.msra.mxu0 %v1908_v20  ;;  %2114 = vmatpush.bf16.msra.mxu1 %v1908_v20  ;;  %238 = vst [vmem:[#allocation2 + $0x90] sm:$0xff] %v2240_v8 }
  0x23   : > { %2115 = vmatpush.bf16.msra.mxu2 %v1908_v20  ;;  %2116 = vmatpush.bf16.msra.mxu3 %v1908_v20  ;;  %239 = vst [vmem:[#allocation2 + $0x98] sm:$0xff] %v2240_v8 }
  0x24   : > { %240 = vst [vmem:[#allocation2 + $0xa0] sm:$0xff] %v2240_v8 }
  0x25   : > { %241 = vst [vmem:[#allocation2 + $0xa8] sm:$0xff] %v2240_v8 }
  0x26   : > { %568 = vmatpush.bf16.msra.mxu0 %v1904_v23  ;;  %2117 = vmatpush.bf16.msra.mxu1 %v1904_v23  ;;  %242 = vst [vmem:[#allocation2 + $0xb0] sm:$0xff] %v2240_v8 }
  0x27   : > { %2118 = vmatpush.bf16.msra.mxu2 %v1904_v23  ;;  %2119 = vmatpush.bf16.msra.mxu3 %v1904_v23  ;;  %243 = vst [vmem:[#allocation2 + $0xb8] sm:$0xff] %v2240_v8 }
  0x28   : > { %244 = vst [vmem:[#allocation2 + $0xc0] sm:$0xff] %v2240_v8 }
  0x29   : > { %245 = vst [vmem:[#allocation2 + $0xc8] sm:$0xff] %v2240_v8 }
  0x2a   : > { %569 = vmatpush.bf16.msra.mxu0 %v1900_v26  ;;  %2120 = vmatpush.bf16.msra.mxu1 %v1900_v26  ;;  %246 = vst [vmem:[#allocation2 + $0xd0] sm:$0xff] %v2240_v8 }
  0x2b   : > { %2121 = vmatpush.bf16.msra.mxu2 %v1900_v26  ;;  %2122 = vmatpush.bf16.msra.mxu3 %v1900_v26  ;;  %247 = vst [vmem:[#allocation2 + $0xd8] sm:$0xff] %v2240_v8  ;;  %v1971_v26 = vld [vmem:[%s3015_s2 + $0xcc] sm:$0xf] }
  0x2c   : > { %248 = vst [vmem:[#allocation2 + $0xe0] sm:$0xff] %v2240_v8 }
  0x2d   : > { %570 = vmatmul.bf16.vlgmr.msra.gmra.mxu0 %v478_v29  ;;  %249 = vst [vmem:[#allocation2 + $0xe8] sm:$0xff] %v2240_v8  ;;  %v306_v29 = vld [vmem:[%s2317_s13 + $0xb0] sm:$0xff] }
  0x2e   : > { %250 = vst [vmem:[#allocation2 + $0xf0] sm:$0xff] %v2240_v8  ;;  %801 = vmatpush.bf16.msrb.mxu1 %v1988_v4 }
  0x2f   : > { %251 = vst [vmem:[#allocation2 + $0xf8] sm:$0xff] %v2240_v8  ;;  %890 = vmatpush.bf16.msrb.mxu2 %v1992_v48  ;;  %v1955_v48 = vld [vmem:[%s3015_s2 + $0x7c] sm:$0xf] }
  0x30   : > { %252 = vst [vmem:[#allocation3] sm:$0xff] %v2240_v8 }
  0x31   : > { %253 = vst [vmem:[#allocation3 + $0x8] sm:$0xff] %v2240_v8 }
  0x32   : > { %254 = vst [vmem:[#allocation3 + $0x10] sm:$0xff] %v2240_v8  ;;  %802 = vmatpush.bf16.msrb.mxu1 %v1980_v13  ;;  %v308_v13 = vld [vmem:[%s2317_s13 + $0xc0] sm:$0xff] }
  0x33   : > { %255 = vst [vmem:[#allocation3 + $0x18] sm:$0xff] %v2240_v8  ;;  %891 = vmatpush.bf16.msrb.mxu2 %v1984_v54  ;;  %v1933_v54 = vld [vmem:[%s3015_s2 + $0x18] sm:$0xf0] }
  0x34   : > { %256 = vst [vmem:[#allocation3 + $0x20] sm:$0xff] %v2240_v8 }
  0x35   : > { %257 = vst [vmem:[#allocation3 + $0x28] sm:$0xff] %v2240_v8 }
  0x36   : > { %258 = vst [vmem:[#allocation3 + $0x30] sm:$0xff] %v2240_v8 }
  0x37   : > { %259 = vst [vmem:[#allocation3 + $0x38] sm:$0xff] %v2240_v8  ;;  %892 = vmatpush.bf16.msrb.mxu2 %v1976_v1 }
  0x38   : > { %260 = vst [vmem:[#allocation3 + $0x40] sm:$0xff] %v2240_v8 }
  0x39   : > { %261 = vst [vmem:[#allocation3 + $0x48] sm:$0xff] %v2240_v8 }
  0x3a   : > { %262 = vst [vmem:[#allocation3 + $0x50] sm:$0xff] %v2240_v8 }
  0x3b   : > { %263 = vst [vmem:[#allocation3 + $0x58] sm:$0xff] %v2240_v8 }
  0x3c   : > { %264 = vst [vmem:[#allocation3 + $0x60] sm:$0xff] %v2240_v8 }
  0x3d   : > { %265 = vst [vmem:[#allocation3 + $0x68] sm:$0xff] %v2240_v8 }
  0x3e   : > { %266 = vst [vmem:[#allocation3 + $0x70] sm:$0xff] %v2240_v8 }
  0x3f   : > { %267 = vst [vmem:[#allocation3 + $0x78] sm:$0xff] %v2240_v8 }
  0x40   : > { %268 = vst [vmem:[#allocation3 + $0x80] sm:$0xff] %v2240_v8 }
  0x41   : > { %269 = vst [vmem:[#allocation3 + $0x88] sm:$0xff] %v2240_v8 }
  0x42   : > { %270 = vst [vmem:[#allocation3 + $0x90] sm:$0xff] %v2240_v8 }
  0x43   : > { %271 = vst [vmem:[#allocation3 + $0x98] sm:$0xff] %v2240_v8 }
  0x44   : > { %272 = vst [vmem:[#allocation3 + $0xa0] sm:$0xff] %v2240_v8 }
  0x45   : > { %273 = vst [vmem:[#allocation3 + $0xa8] sm:$0xff] %v2240_v8 }
  0x46   : > { %274 = vst [vmem:[#allocation3 + $0xb0] sm:$0xff] %v2240_v8 }
  0x47   : > { %275 = vst [vmem:[#allocation3 + $0xb8] sm:$0xff] %v2240_v8 }
  0x48   : > { %276 = vst [vmem:[#allocation3 + $0xc0] sm:$0xff] %v2240_v8 }
  0x49   : > { %277 = vst [vmem:[#allocation3 + $0xc8] sm:$0xff] %v2240_v8 }
  0x4a   : > { %278 = vst [vmem:[#allocation3 + $0xd0] sm:$0xff] %v2240_v8 }
  0x4b   : > { %279 = vst [vmem:[#allocation3 + $0xd8] sm:$0xff] %v2240_v8 }
  0x4c   : > { %280 = vst [vmem:[#allocation3 + $0xe0] sm:$0xff] %v2240_v8 }
  0x4d   : > { %281 = vst [vmem:[#allocation3 + $0xe8] sm:$0xff] %v2240_v8 }
  0x4e   : > { %282 = vst [vmem:[#allocation3 + $0xf0] sm:$0xff] %v2240_v8 }
  0x4f   : > { %283 = vst [vmem:[#allocation3 + $0xf8] sm:$0xff] %v2240_v8  ;;  %v2075_v8 = vld [vmem:[%s3015_s2 + $0xa8] sm:$0xf] }
  0x50   : > { %319 = vst.msk [vmem:[#allocation2 + $0x10] sm:$0xff] %vm316_vm0, %v286_v30  ;;  %v1968_v10 = vor.u32 %v2075_v8, %v1965_v9  ;;  %v307_v30 = vld [vmem:[%s2317_s13 + $0xb8] sm:$0xff] }
  0x51   : > { %320 = vst.msk [vmem:[#allocation2 + $0x18] sm:$0xff] %vm316_vm0, %v287_v31  ;;  %v1972_v31 = vor.u32 %v2078_v28, %v1971_v26 }
  0x52   : > { %321 = vst.msk [vmem:[#allocation2 + $0x20] sm:$0xff] %vm316_vm0, %v288_v32  ;;  %893 = vmatpush.bf16.msrb.mxu2 %v1968_v10 }
  0x53   : > { %322 = vst.msk [vmem:[#allocation2 + $0x28] sm:$0xff] %vm316_vm0, %v289_v33  ;;  %v2071_v33 = vld [vmem:[%s3015_s2 + $0x58] sm:$0xf]  ;;  %803 = vmatpush.bf16.msrb.mxu1 %v1972_v31 }
  0x54   : > { %323 = vst.msk [vmem:[#allocation2 + $0x30] sm:$0xff] %vm316_vm0, %v290_v34  ;;  %v1949_v34 = vld [vmem:[%s3015_s2 + $0x68] sm:$0xf0] }
  0x55   : > { %324 = vst.msk [vmem:[#allocation2 + $0x38] sm:$0xff] %vm316_vm0, %v291_v35  ;;  %v1952_v35 = vor.u32 %v2071_v33, %v1949_v34 }
  0x56   : > { %325 = vst.msk [vmem:[#allocation2 + $0x40] sm:$0xff] %vm316_vm0, %v292_v38  ;;  %894 = vmatpush.bf16.msrb.mxu2 %v1960_v27 }
  0x57   : > { %v416_v36 = vld [vmem:[#allocation2 + $0x10] sm:$0xff]  ;;  %326 = vst.msk [vmem:[#allocation2 + $0x48] sm:$0xff] %vm316_vm0, %v293_v39 }
  0x58   : > { %v417_v37 = vld [vmem:[#allocation2 + $0x18] sm:$0xff]  ;;  %333 = vst.msk [vmem:[#allocation2 + $0x80] sm:$0xff] %vm316_vm0, %v300_v41  ;;  %v2069_v39 = vld [vmem:[%s3015_s2 + $0x30] sm:$0xf] }
  0x59   : > { %v479_v40 = vpack.c.bf16 %v417_v37, %v416_v36  ;;  %334 = vst.msk [vmem:[#allocation2 + $0x88] sm:$0xff] %vm316_vm0, %v301_v42  ;;  %v418_v58 = vld [vmem:[#allocation2 + $0x20] sm:$0xff]  ;;  %v2076_v37 = vld [vmem:[%s3015_s2 + $0xb4] sm:$0xf0] }
  0x5a   : > { %327 = vst.msk [vmem:[#allocation2 + $0x50] sm:$0xff] %vm316_vm0, %v294_v43  ;;  %v419_v59 = vld [vmem:[#allocation2 + $0x28] sm:$0xff]  ;;  %v1963_v36 = vld [vmem:[%s3015_s2 + $0xa4] sm:$0xf]  ;;  %895 = vmatpush.bf16.msrb.mxu2 %v1952_v35 }
  0x5b   : > { %575 = vmatmul.bf16.gmra.mxu0 %v479_v40  ;;  %328 = vst.msk [vmem:[#allocation2 + $0x58] sm:$0xff] %vm316_vm0, %v295_v44  ;;  %v480_v7 = vpack.c.bf16 %v419_v59, %v418_v58  ;;  %v420_v21 = vld [vmem:[#allocation2 + $0x30] sm:$0xff]  ;;  %v1964_v38 = vor.u32 %v2076_v37, %v1963_v36  ;;  %v1941_v40 = vld [vmem:[%s3015_s2 + $0x40] sm:$0xf0] }
  0x5c   : > { %335 = vst.msk [vmem:[#allocation2 + $0x90] sm:$0xff] %vm316_vm0, %v302_v47  ;;  %v421_v22 = vld [vmem:[#allocation2 + $0x38] sm:$0xff]  ;;  %v1944_v41 = vor.u32 %v2069_v39, %v1941_v40  ;;  %v312_v37 = vld [vmem:[%s2317_s13 + $0xe0] sm:$0xff] }
  0x5d   : > { %v422_v53 = vld [vmem:[#allocation2 + $0x40] sm:$0xff]  ;;  %336 = vst.msk [vmem:[#allocation2 + $0x98] sm:$0xff] %vm316_vm0, %v303_v49  ;;  %v481_v32 = vpack.c.bf16 %v421_v22, %v420_v21  ;;  %804 = vmatpush.bf16.msrb.mxu1 %v1964_v38  ;;  %v2074_v49 = vld [vmem:[%s3015_s2 + $0x8c] sm:$0xf0]  ;;  %v313_v38 = vld [vmem:[%s2317_s13 + $0xe8] sm:$0xff] }
  0x5e   : > { %v423_v56 = vld [vmem:[#allocation2 + $0x48] sm:$0xff]  ;;  %329 = vst.msk [vmem:[#allocation2 + $0x60] sm:$0xff] %vm316_vm0, %v296_v52  ;;  %896 = vmatpush.bf16.msrb.mxu2 %v1944_v41  ;;  %v1956_v51 = vor.u32 %v2074_v49, %v1955_v48  ;;  %v310_v22 = vld [vmem:[%s2317_s13 + $0xd0] sm:$0xff] }
  0x5f   : > { %v482_v57 = vpack.c.bf16 %v423_v56, %v422_v53  ;;  %v430_v60 = vld [vmem:[#allocation2 + $0x80] sm:$0xff]  ;;  %330 = vst.msk [vmem:[#allocation2 + $0x68] sm:$0xff] %vm316_vm0, %v297_v55  ;;  %v2072_v52 = vld [vmem:[%s3015_s2 + $0x64] sm:$0xf0] }
  0x60   : > { %v431_v61 = vld [vmem:[#allocation2 + $0x88] sm:$0xff]  ;;  %337 = vst.msk [vmem:[#allocation2 + $0xa0] sm:$0xff] %vm316_vm0, %v304_v5  ;;  %v1948_v58 = vor.u32 %v2072_v52, %v1947_v50  ;;  %v314_v52 = vld [vmem:[%s2317_s13 + $0xf0] sm:$0xff] }
  0x61   : > { %590 = vmatmul.bf16.vlgmr.msra.gmra.mxu1 %v482_v57  ;;  %v486_v0 = vpack.c.bf16 %v431_v61, %v430_v60  ;;  %338 = vst.msk [vmem:[#allocation2 + $0xa8] sm:$0xff] %vm316_vm0, %v305_v6  ;;  %v424_v16 = vld [vmem:[#allocation2 + $0x50] sm:$0xff]  ;;  %v2067_v53 = vld [vmem:[%s3015_s2 + $0x8] sm:$0xf]  ;;  %v2546_v6 = vld [vmem:[%s3016_s3] ss:$0 sm:$0xff] }
  0x62   : > { %331 = vst.msk [vmem:[#allocation2 + $0x70] sm:$0xff] %vm316_vm0, %v298_v14  ;;  %v425_v17 = vld [vmem:[#allocation2 + $0x58] sm:$0xff]  ;;  %v1936_v55 = vor.u32 %v2067_v53, %v1933_v54  ;;  %805 = vmatpush.bf16.msrb.mxu1 %v1956_v51  ;;  %v309_v14 = vld [vmem:[%s2317_s13 + $0xc8] sm:$0xff] }
  0x63   : > { %610 = vmatmul.bf16.vlgmr.msra.gmra.mxu2 %v486_v0  ;;  %332 = vst.msk [vmem:[#allocation2 + $0x78] sm:$0xff] %vm316_vm0, %v299_v15  ;;  %v483_v18 = vpack.c.bf16 %v425_v17, %v424_v16  ;;  %v432_v19 = vld [vmem:[#allocation2 + $0x90] sm:$0xff]  ;;  %v1931_v0 = vld [vmem:[%s3015_s2 + $0x4] sm:$0xf]  ;;  %v315_v53 = vld [vmem:[%s2317_s13 + $0xf8] sm:$0xff] }
  0x64   : > { %v433_v20 = vld [vmem:[#allocation2 + $0x98] sm:$0xff]  ;;  %339 = vst.msk [vmem:[#allocation2 + $0xb0] sm:$0xff] %vm316_vm0, %v306_v29  ;;  %897 = vmatpush.bf16.msrb.mxu2 %v1936_v55  ;;  %v1932_v4 = vor.u32 %v2068_v3, %v1931_v0 }
  0x65   : > { %v487_v23 = vpack.c.bf16 %v433_v20, %v432_v19  ;;  %340 = vst.msk [vmem:[#allocation2 + $0xb8] sm:$0xff] %vm316_vm0, %v307_v30  ;;  %v426_v42 = vld [vmem:[#allocation2 + $0x60] sm:$0xff] }
  0x66   : > { %v427_v43 = vld [vmem:[#allocation2 + $0x68] sm:$0xff]  ;;  %806 = vmatpush.bf16.msrb.mxu1 %v1948_v58  ;;  %341 = vst.msk [vmem:[#allocation2 + $0xc0] sm:$0xff] %vm316_vm0, %v308_v13  ;;  %v2023_v58 = vld [vmem:[%s3015_s2 + $0x124] sm:$0xf] }
  0x67   : > { %v484_v44 = vpack.c.bf16 %v427_v43, %v426_v42  ;;  %v434_v45 = vld [vmem:[#allocation2 + $0xa0] sm:$0xff]  ;;  %342 = vst.msk [vmem:[#allocation2 + $0xc8] sm:$0xff] %vm316_vm0, %v309_v14  ;;  %v2088_v14 = vld [vmem:[%s3015_s2 + $0xe4] sm:$0xf0] }
  0x68   : > { %v435_v46 = vld [vmem:[#allocation2 + $0xa8] sm:$0xff]  ;;  %343 = vst.msk [vmem:[#allocation2 + $0xd0] sm:$0xff] %vm316_vm0, %v310_v22 }
  0x69   : > { %v488_v47 = vpack.c.bf16 %v435_v46, %v434_v45  ;;  %v428_v56 = vld [vmem:[#allocation2 + $0x70] sm:$0xff]  ;;  %345 = vst.msk [vmem:[#allocation2 + $0xe0] sm:$0xff] %vm316_vm0, %v312_v37  ;;  %v715_v37 = vld [vmem:[%s3016_s3 + $0x1] sm:$0x3] }
  0x6a   : > { %v429_v57 = vld [vmem:[#allocation2 + $0x78] sm:$0xff]  ;;  %807 = vmatpush.bf16.msrb.mxu1 %v1940_v2  ;;  %346 = vst.msk [vmem:[#allocation2 + $0xe8] sm:$0xff] %vm316_vm0, %v313_v38 }
  0x6b   : > { %580 = vmatmul.bf16.gmra.mxu0 %v480_v7  ;;  %v485_v59 = vpack.c.bf16 %v429_v57, %v428_v56  ;;  %v436_v60 = vld [vmem:[#allocation2 + $0xb0] sm:$0xff]  ;;  %347 = vst.msk [vmem:[#allocation2 + $0xf0] sm:$0xff] %vm316_vm0, %v314_v52 }
  0x6c   : > { %v437_v61 = vld [vmem:[#allocation2 + $0xb8] sm:$0xff]  ;;  %348 = vst.msk [vmem:[#allocation2 + $0xf8] sm:$0xff] %vm316_vm0, %v315_v53 }
  0x6d   : > { %v489_v1 = vpack.c.bf16 %v437_v61, %v436_v60  ;;  %v438_v16 = vld [vmem:[#allocation2 + $0xc0] sm:$0xff] }
  0x6e   : > { %808 = vmatpush.bf16.msrb.mxu1 %v1932_v4  ;;  %v439_v17 = vld [vmem:[#allocation2 + $0xc8] sm:$0xff] }
  0x6f   : > { %v440_v29 = vld [vmem:[#allocation2 + $0xd0] sm:$0xff] }
  0x70   : > { %v442_v45 = vld [vmem:[#allocation2 + $0xe0] sm:$0xff] }
  0x71   : > { %595 = vmatmul.bf16.gmra.mxu1 %v483_v18  ;;  %v490_v18 = vpack.c.bf16 %v439_v17, %v438_v16  ;;  %v443_v46 = vld [vmem:[#allocation2 + $0xe8] sm:$0xff] }
  0x72   : > { %v444_v62 = vld [vmem:[#allocation2 + $0xf0] sm:$0xff] }
  0x73   : > { %615 = vmatmul.bf16.gmra.mxu2 %v487_v23  ;;  %630 = vmatmul.bf16.vlgmr.msra.gmra.mxu3 %v490_v18  ;;  %v311_v23 = vld [vmem:[%s2317_s13 + $0xd8] sm:$0xff] }
  0x74   : > { %344 = vst.msk [vmem:[#allocation2 + $0xd8] sm:$0xff] %vm316_vm0, %v311_v23  ;;  %v445_v63 = vld [vmem:[#allocation2 + $0xf8] sm:$0xff] }
  0x75   : > { %v493_v0 = vpack.c.bf16 %v445_v63, %v444_v62 }
  0x7b   : > { %585 = vmatmul.bf16.gmra.mxu0 %v481_v32  ;;  %v441_v30 = vld [vmem:[#allocation2 + $0xd8] sm:$0xff] }
  0x7c   : > { %v491_v31 = vpack.c.bf16 %v441_v30, %v440_v29 }
  0x81   : > { %600 = vmatmul.bf16.gmra.mxu1 %v484_v44 }
  0x83   : > { %620 = vmatmul.bf16.gmra.mxu2 %v488_v47  ;;  %635 = vmatmul.bf16.gmra.mxu3 %v491_v31  ;;  %v492_v47 = vpack.c.bf16 %v443_v46, %v442_v45 }
  0x91   : > { %605 = vmatmul.bf16.gmra.mxu1 %v485_v59  ;;  %v2090_v59 = vld [vmem:[%s3015_s2 + $0x134] sm:$0xf0] }
  0x92   : > { %v2024_v60 = vor.u32 %v2090_v59, %v2023_v58  ;;  %v349_v58 = vld [vmem:[%s2644_s17] sm:$0xff] }
  0x93   : > { %625 = vmatmul.bf16.gmra.mxu2 %v489_v1  ;;  %640 = vmatmul.bf16.gmra.mxu3 %v492_v47  ;;  %382 = vst.msk [vmem:[#allocation3] sm:$0xff] %vm381_vm1, %v349_v58 }
  0x94   : > { %1223 = vmatpush.bf16.msrb.mxu3 %v2024_v60 }
  0xa3   : > { %645 = vmatmul.bf16.gmra.mxu3 %v493_v0 }
  0xaa   : > { %v571_v5 = vpop.f32.mrf.mxu0 }
  0xab   : > { %v572_v7 = vadd.f32 %v2546_v6, %v571_v5 }
  0xad   : > { %v651_v10 = vmax.f32 %v572_v7, 0.0 }
  0xb2   : > { %v573_v8 = vpop.f32.mrf.mxu0 }
  0xb3   : > { %v574_v9 = vadd.f32 %v2546_v6, %v573_v8 }
  0xb5   : > { %v652_v11 = vmax.f32 %v574_v9, 0.0 }
  0xb7   : > { %v683_v12 = vpack.c.bf16 %v652_v11, %v651_v10  ;;  %v2019_v10 = vld [vmem:[%s3015_s2 + $0xfc] sm:$0xf]  ;;  %v2089_v11 = vld [vmem:[%s3015_s2 + $0x10c] sm:$0xf0] }
  0xb8   : > { %v2020_v13 = vor.u32 %v2089_v11, %v2019_v10  ;;  %v1999_v11 = vld [vmem:[%s3015_s2 + $0x34] sm:$0xf] }
  0xb9   : > { %809 = vmatmul.bf16.vlgmr.msrb.gmra.mxu1 %v683_v12  ;;  %898 = vmatmul.bf16.vlgmr.msrb.gmra.mxu2 %v683_v12  ;;  %v2015_v12 = vld [vmem:[%s3015_s2 + $0xd4] sm:$0xf] }
  0xba   : > { %1224 = vmatpush.bf16.msrb.mxu3 %v2020_v13  ;;  %v350_v13 = vld [vmem:[%s2644_s17 + $0x8] sm:$0xff] }
  0xbb   : > { %383 = vst.msk [vmem:[#allocation3 + $0x8] sm:$0xff] %vm381_vm1, %v350_v13 }
  0xd8   : > { %v576_v15 = vpop.f32.mrf.mxu0 }
  0xd9   : > { %v577_v19 = vadd.f32 %v2546_v6, %v576_v15  ;;  %v2016_v15 = vor.u32 %v2088_v14, %v2015_v12  ;;  %v2084_v12 = vld [vmem:[%s3015_s2 + $0x44] sm:$0xf0] }
  0xda   : > { %v2000_v14 = vor.u32 %v2084_v12, %v1999_v11  ;;  %v356_v12 = vld [vmem:[%s2644_s17 + $0x38] sm:$0xff] }
  0xdb   : > { %v653_v24 = vmax.f32 %v577_v19, 0.0  ;;  %1225 = vmatpush.bf16.msrb.mxu3 %v2016_v15  ;;  %389 = vst.msk [vmem:[#allocation3 + $0x38] sm:$0xff] %vm381_vm1, %v356_v12 }
  0xde   : > { %v591_v27 = vpop.f32.mrf.mxu1 }
  0xdf   : > { %v592_v1 = vadd.f32 %v2546_v6, %v591_v27  ;;  %v2007_v27 = vld [vmem:[%s3015_s2 + $0x84] sm:$0xf] }
  0xe0   : > { %v578_v20 = vpop.f32.mrf.mxu0 }
  0xe1   : > { %v579_v21 = vadd.f32 %v2546_v6, %v578_v20  ;;  %v659_v4 = vmax.f32 %v592_v1, 0.0 }
  0xe3   : > { %v654_v25 = vmax.f32 %v579_v21, 0.0 }
  0xe5   : > { %v684_v26 = vpack.c.bf16 %v654_v25, %v653_v24  ;;  %v2011_v24 = vld [vmem:[%s3015_s2 + $0xac] sm:$0xf]  ;;  %v2087_v25 = vld [vmem:[%s3015_s2 + $0xbc] sm:$0xf0] }
  0xe6   : > { %v2560_v32 = vpop.f32.mrf.mxu2  ;;  %v593_v34 = vpop.f32.mrf.mxu1 }
  0xe7   : > { %814 = vmatmul.bf16.gmra.mxu1 %v684_v26  ;;  %903 = vmatmul.bf16.gmra.mxu2 %v684_v26  ;;  %v594_v2 = vadd.f32 %v2546_v6, %v593_v34  ;;  %v2012_v26 = vor.u32 %v2087_v25, %v2011_v24  ;;  %v447_v24 = vld [vmem:[#allocation3 + $0x8] sm:$0xff]  ;;  %v351_v25 = vld [vmem:[%s2644_s17 + $0x10] sm:$0xff] }
  0xe8   : > { %v581_v28 = vpop.f32.mrf.mxu0  ;;  %384 = vst.msk [vmem:[#allocation3 + $0x10] sm:$0xff] %vm381_vm1, %v351_v25 }
  0xe9   : > { %v582_v33 = vadd.f32 %v2546_v6, %v581_v28  ;;  %v660_v5 = vmax.f32 %v594_v2, 0.0  ;;  %v2086_v28 = vld [vmem:[%s3015_s2 + $0x94] sm:$0xf0]  ;;  %1226 = vmatpush.bf16.msrb.mxu3 %v2012_v26  ;;  %v1995_v26 = vld [vmem:[%s3015_s2 + $0xc] sm:$0xf] }
  0xea   : > { %v2008_v29 = vor.u32 %v2086_v28, %v2007_v27  ;;  %v2083_v27 = vld [vmem:[%s3015_s2 + $0x1c] sm:$0xf0] }
  0xeb   : > { %v655_v39 = vmax.f32 %v582_v33, 0.0  ;;  %v687_v8 = vpack.c.bf16 %v660_v5, %v659_v4 }
  0xed   : > { %1227 = vmatpush.bf16.msrb.mxu3 %v2008_v29 }
  0xee   : > { %v2568_v42 = vpop.f32.mrf.mxu2  ;;  %v596_v44 = vpop.f32.mrf.mxu1 }
  0xef   : > { %v597_v16 = vadd.f32 %v2546_v6, %v596_v44  ;;  %v2085_v44 = vld [vmem:[%s3015_s2 + $0x6c] sm:$0xf0] }
  0xf0   : > { %v583_v35 = vpop.f32.mrf.mxu0 }
  0xf1   : > { %v584_v36 = vadd.f32 %v2546_v6, %v583_v35  ;;  %v661_v19 = vmax.f32 %v597_v16, 0.0  ;;  %v446_v16 = vld [vmem:[#allocation3] sm:$0xff] }
  0xf3   : > { %v656_v40 = vmax.f32 %v584_v36, 0.0 }
  0xf5   : > { %v685_v41 = vpack.c.bf16 %v656_v40, %v655_v39  ;;  %v2627_v39 = vperm.slane %v715_v37, 0 }
  0xf6   : > { %v2571_v49 = vpop.f32.mrf.mxu2  ;;  %v598_v56 = vpop.f32.mrf.mxu1 }
  0xf7   : > { %819 = vmatmul.bf16.gmra.mxu1 %v685_v41  ;;  %908 = vmatmul.bf16.gmra.mxu2 %v685_v41  ;;  %v599_v17 = vadd.f32 %v2546_v6, %v598_v56  ;;  %v2629_v41 = vperm.slane %v715_v37, 1 }
  0xf8   : > { %v586_v43 = vpop.f32.mrf.mxu0 }
  0xf9   : > { %v587_v48 = vadd.f32 %v2546_v6, %v586_v43  ;;  %v662_v20 = vmax.f32 %v599_v17, 0.0  ;;  %v2003_v43 = vld [vmem:[%s3015_s2 + $0x5c] sm:$0xf]  ;;  %v612_v17 = vadd.f32 %v2546_v6, %v2560_v32 }
  0xfa   : > { %v2004_v46 = vor.u32 %v2085_v44, %v2003_v43  ;;  %v353_v44 = vld [vmem:[%s2644_s17 + $0x20] sm:$0xff] }
  0xfb   : > { %v657_v54 = vmax.f32 %v587_v48, 0.0  ;;  %v688_v22 = vpack.c.bf16 %v662_v20, %v661_v19  ;;  %v614_v19 = vadd.f32 %v2546_v6, %v2568_v42  ;;  %v667_v32 = vmax.f32 %v612_v17, 0.0  ;;  %386 = vst.msk [vmem:[#allocation3 + $0x20] sm:$0xff] %vm381_vm1, %v353_v44 }
  0xfc   : > { %1228 = vmatpush.bf16.msrb.mxu3 %v2004_v46 }
  0xfd   : > { %v668_v29 = vmax.f32 %v614_v19, 0.0  ;;  %v448_v19 = vld [vmem:[#allocation3 + $0x10] sm:$0xff] }
  0xfe   : > { %v2584_v61 = vpop.f32.mrf.mxu2  ;;  %v601_v3 = vpop.f32.mrf.mxu1 }
  0xff   : > { %v602_v31 = vadd.f32 %v2546_v6, %v601_v3  ;;  %v691_v37 = vpack.c.bf16 %v668_v29, %v667_v32  ;;  %v619_v43 = vadd.f32 %v2546_v6, %v2584_v61 }
 0x100   : > { %v588_v50 = vpop.f32.mrf.mxu0  ;;  %1229 = vmatpush.bf16.msrb.mxu3 %v2000_v14 }
 0x101   : > { %v589_v51 = vadd.f32 %v2546_v6, %v588_v50  ;;  %v663_v34 = vmax.f32 %v602_v31, 0.0  ;;  %v670_v46 = vmax.f32 %v619_v43, 0.0 }
 0x103   : > { %v658_v55 = vmax.f32 %v589_v51, 0.0 }
 0x105   : > { %v686_v57 = vpack.c.bf16 %v658_v55, %v657_v54 }
 0x106   : > { %v2588_v7 = vpop.f32.mrf.mxu2  ;;  %v603_v9 = vpop.f32.mrf.mxu1 }
 0x107   : > { %824 = vmatmul.bf16.gmra.mxu1 %v686_v57  ;;  %913 = vmatmul.bf16.gmra.mxu2 %v686_v57  ;;  %v604_v33 = vadd.f32 %v2546_v6, %v603_v9  ;;  %v622_v61 = vadd.f32 %v2546_v6, %v2588_v7 }
 0x109   : > { %v664_v35 = vmax.f32 %v604_v33, 0.0 }
 0x10b   : > { %v689_v40 = vpack.c.bf16 %v664_v35, %v663_v34 }
 0x10e   : > { %v2604_v18 = vpop.f32.mrf.mxu2  ;;  %v606_v21 = vpop.f32.mrf.mxu1 }
 0x10f   : > { %v607_v53 = vadd.f32 %v2546_v6, %v606_v21 }
 0x111   : > { %v665_v60 = vmax.f32 %v607_v53, 0.0 }
 0x116   : > { %v2606_v23 = vpop.f32.mrf.mxu2  ;;  %v608_v30 = vpop.f32.mrf.mxu1 }
 0x117   : > { %829 = vmatmul.bf16.gmra.mxu1 %v687_v8  ;;  %918 = vmatmul.bf16.gmra.mxu2 %v687_v8  ;;  %v609_v54 = vadd.f32 %v2546_v6, %v608_v30  ;;  %v1996_v30 = vor.u32 %v2083_v27, %v1995_v26 }
 0x119   : > { %v666_v62 = vmax.f32 %v609_v54, 0.0  ;;  %1230 = vmatpush.bf16.msrb.mxu3 %v1996_v30  ;;  %v624_v54 = vadd.f32 %v2546_v6, %v2604_v18 }
 0x11b   : > { %v690_v4 = vpack.c.bf16 %v666_v62, %v665_v60  ;;  %v355_v60 = vld [vmem:[%s2644_s17 + $0x30] sm:$0xff]  ;;  %v671_v62 = vmax.f32 %v622_v61, 0.0 }
 0x11c   : > { %388 = vst.msk [vmem:[#allocation3 + $0x30] sm:$0xff] %vm381_vm1, %v355_v60 }
 0x11e   : > { %v2622_v36 = vpop.f32.mrf.mxu2 }
 0x127   : > { %834 = vmatmul.bf16.gmra.mxu1 %v688_v22  ;;  %923 = vmatmul.bf16.gmra.mxu2 %v688_v22 }
 0x136   : > { %v810_v38 = vpop.f32.mrf.mxu1 }
 0x137   : > { %839 = vmatmul.bf16.gmra.mxu1 %v689_v40  ;;  %928 = vmatmul.bf16.gmra.mxu2 %v689_v40  ;;  %v811_v45 = vadd.f32 %v810_v38, %v2627_v39  ;;  %v352_v38 = vld [vmem:[%s2644_s17 + $0x18] sm:$0xff]  ;;  %v617_v40 = vadd.f32 %v2546_v6, %v2571_v49 }
 0x138   : > { %385 = vst.msk [vmem:[#allocation3 + $0x18] sm:$0xff] %vm381_vm1, %v352_v38 }
 0x139   : > { %v1651_v50 = vmul.f32 %v811_v45, %v811_v45 }
 0x13c   : > { %v899_v47 = vpop.f32.mrf.mxu2 }
 0x13d   : > { %v900_v48 = vadd.f32 %v899_v47, %v2629_v41 }
 0x13e   : > { %v812_v55 = vpop.f32.mrf.mxu1 }
 0x13f   : > { %v979_v51 = vmul.f32 0.5, %v900_v48  ;;  %v1619_v52 = vadd.f32 1.0, %v900_v48  ;;  %v813_v59 = vadd.f32 %v812_v55, %v2627_v39 }
 0x141   : > { %v1011_v56 = vmul.f32 1.442695, %v979_v51  ;;  %v1683_v57 = vsub.f32 %v1619_v52, %v1651_v50  ;;  %v1652_v1 = vmul.f32 %v813_v59, %v813_v59  ;;  %v354_v50 = vld [vmem:[%s2644_s17 + $0x28] sm:$0xff] }
 0x142   : > { %387 = vst.msk [vmem:[#allocation3 + $0x28] sm:$0xff] %vm381_vm1, %v354_v50 }
 0x143   : > { %2135 = vpow2.f32 %v1011_v56 }
 0x144   : > { %v901_v63 = vpop.f32.mrf.mxu2 }
 0x145   : > { %v902_v0 = vadd.f32 %v901_v63, %v2629_v41  ;;  %v672_v63 = vmax.f32 %v624_v54, 0.0 }
 0x147   : > { %v980_v2 = vmul.f32 0.5, %v902_v0  ;;  %v1620_v3 = vadd.f32 1.0, %v902_v0  ;;  %844 = vmatmul.bf16.gmra.mxu1 %v690_v4  ;;  %933 = vmatmul.bf16.gmra.mxu2 %v690_v4 }
 0x149   : > { %v2136_v5 = vpop.eup %2135  ;;  %v1013_v8 = vmul.f32 1.442695, %v980_v2  ;;  %v1684_v9 = vsub.f32 %v1620_v3, %v1652_v1  ;;  %v2692_v2 = vpop.f32.mrf.mxu3 }
 0x14a   : > { %v1715_v10 = vmul.f32 %v2136_v5, %v2136_v5  ;;  %v1075_v21 = vmul.f32 %v2136_v5, %v446_v16 }
 0x14b   : > { %2137 = vpow2.f32 %v1013_v8  ;;  %v693_v8 = vpack.c.bf16 %v672_v63, %v671_v62  ;;  %v450_v63 = vld [vmem:[#allocation3 + $0x20] sm:$0xff] }
 0x14c   : > { %v1747_v15 = vsub.f32 %v1683_v57, %v1715_v10  ;;  %v1107_v31 = vadd.f32 %v1075_v21, %v811_v45  ;;  %v669_v45 = vmax.f32 %v617_v40, 0.0 }
 0x14e   : > { %v692_v48 = vpack.c.bf16 %v670_v46, %v669_v45 }
 0x151   : > { %v2138_v20 = vpop.eup %2137  ;;  %v633_v32 = vpop.f32.mrf.mxu3 }
 0x152   : > { %v1716_v22 = vmul.f32 %v2138_v20, %v2138_v20  ;;  %v1076_v28 = vmul.f32 %v2138_v20, %v447_v24  ;;  %v627_v20 = vadd.f32 %v2546_v6, %v2606_v23  ;;  %v629_v24 = vadd.f32 %v2546_v6, %v2622_v36 }
 0x154   : > { %v1748_v42 = vsub.f32 %v1684_v9, %v1716_v22  ;;  %v1108_v33 = vadd.f32 %v1076_v28, %v813_v59  ;;  %v449_v28 = vld [vmem:[#allocation3 + $0x18] sm:$0xff]  ;;  %v673_v23 = vmax.f32 %v627_v20, 0.0 }
 0x156   : > { %v1779_v34 = vadd.f32 %v1748_v42, %v1747_v15  ;;  %v1139_v35 = vpack.c.bf16 %v1108_v33, %v1107_v31  ;;  %v357_v33 = vld [vmem:[%s2644_s17 + $0x40] sm:$0xff] }
 0x157   : > { %849 = vmatmul.bf16.gmra.mxu1 %v691_v37  ;;  %938 = vmatmul.bf16.gmra.mxu2 %v691_v37  ;;  %390 = vst.msk [vmem:[#allocation3 + $0x40] sm:$0xff] %vm381_vm1, %v357_v33 }
 0x158   : > { %1231 = vmatmul.bf16.vlgmr.msrb.gmra.mxu3 %v1139_v35 }
 0x164   : > { %v815_v47 = vpop.f32.mrf.mxu1 }
 0x165   : > { %v816_v51 = vadd.f32 %v815_v47, %v2627_v39 }
 0x167   : > { %854 = vmatmul.bf16.gmra.mxu1 %v692_v48  ;;  %943 = vmatmul.bf16.gmra.mxu2 %v692_v48  ;;  %v1653_v55 = vmul.f32 %v816_v51, %v816_v51 }
 0x16a   : > { %v904_v52 = vpop.f32.mrf.mxu2 }
 0x16b   : > { %v905_v49 = vadd.f32 %v904_v52, %v2629_v41 }
 0x16c   : > { %v817_v53 = vpop.f32.mrf.mxu1 }
 0x16d   : > { %v981_v56 = vmul.f32 0.5, %v905_v49  ;;  %v1621_v57 = vadd.f32 1.0, %v905_v49  ;;  %v818_v0 = vadd.f32 %v817_v53, %v2627_v39 }
 0x16f   : > { %v1015_v58 = vmul.f32 1.442695, %v981_v56  ;;  %v1685_v59 = vsub.f32 %v1621_v57, %v1653_v55  ;;  %v1654_v3 = vmul.f32 %v818_v0, %v818_v0  ;;  %v636_v56 = vpop.f32.mrf.mxu3  ;;  %v358_v57 = vld [vmem:[%s2644_s17 + $0x48] sm:$0xff] }
 0x170   : > { %391 = vst.msk [vmem:[#allocation3 + $0x48] sm:$0xff] %vm381_vm1, %v358_v57 }
 0x171   : > { %2139 = vpow2.f32 %v1015_v58 }
 0x172   : > { %v906_v1 = vpop.f32.mrf.mxu2 }
 0x173   : > { %v907_v7 = vadd.f32 %v906_v1, %v2629_v41  ;;  %v632_v1 = vadd.f32 %v2546_v6, %v2692_v2 }
 0x174   : > { %v820_v18 = vpop.f32.mrf.mxu1 }
 0x175   : > { %v982_v4 = vmul.f32 0.5, %v907_v7  ;;  %v1622_v5 = vadd.f32 1.0, %v907_v7  ;;  %v2697_v14 = vadd.f32 %v820_v18, %v2627_v39 }
 0x177   : > { %v2140_v9 = vpop.eup %2139  ;;  %v1017_v10 = vmul.f32 1.442695, %v982_v4  ;;  %v1686_v11 = vsub.f32 %v1622_v5, %v1654_v3  ;;  %859 = vmatmul.bf16.gmra.mxu1 %v693_v8  ;;  %948 = vmatmul.bf16.gmra.mxu2 %v693_v8  ;;  %v1655_v25 = vmul.f32 %v2697_v14, %v2697_v14  ;;  %v634_v3 = vadd.f32 %v2546_v6, %v633_v32  ;;  %v451_v8 = vld [vmem:[#allocation3 + $0x28] sm:$0xff]  ;;  %v638_v20 = vpop.f32.mrf.mxu3 }
 0x178   : > { %v1717_v13 = vmul.f32 %v2140_v9, %v2140_v9  ;;  %v1077_v29 = vmul.f32 %v2140_v9, %v448_v19 }
 0x179   : > { %2141 = vpow2.f32 %v1017_v10  ;;  %v676_v2 = vmax.f32 %v634_v3, 0.0 }
 0x17a   : > { %v1749_v15 = vsub.f32 %v1685_v59, %v1717_v13  ;;  %v909_v16 = vpop.f32.mrf.mxu2  ;;  %v1109_v43 = vadd.f32 %v1077_v29, %v816_v51  ;;  %v359_v13 = vld [vmem:[%s2644_s17 + $0x50] sm:$0xff] }
 0x17b   : > { %v910_v17 = vadd.f32 %v909_v16, %v2629_v41  ;;  %392 = vst.msk [vmem:[#allocation3 + $0x50] sm:$0xff] %vm381_vm1, %v359_v13 }
 0x17c   : > { %v1780_v21 = vadd.f32 %v1779_v34, %v1749_v15  ;;  %v822_v22 = vpop.f32.mrf.mxu1  ;;  %v674_v34 = vmax.f32 %v629_v24, 0.0 }
 0x17d   : > { %v983_v26 = vmul.f32 0.5, %v910_v17  ;;  %v1623_v27 = vadd.f32 1.0, %v910_v17  ;;  %v823_v36 = vadd.f32 %v822_v22, %v2627_v39  ;;  %v675_v17 = vmax.f32 %v632_v1, 0.0 }
 0x17e   : > { %v694_v61 = vpack.c.bf16 %v674_v34, %v673_v23  ;;  %v360_v23 = vld [vmem:[%s2644_s17 + $0x58] sm:$0xff] }
 0x17f   : > { %v2142_v42 = vpop.eup %2141  ;;  %v1019_v30 = vmul.f32 1.442695, %v983_v26  ;;  %v1687_v31 = vsub.f32 %v1623_v27, %v1655_v25  ;;  %v1656_v50 = vmul.f32 %v823_v36, %v823_v36  ;;  %393 = vst.msk [vmem:[#allocation3 + $0x58] sm:$0xff] %vm381_vm1, %v360_v23 }
 0x180   : > { %v1718_v35 = vmul.f32 %v2142_v42, %v2142_v42  ;;  %v1078_v37 = vmul.f32 %v2142_v42, %v449_v28 }
 0x181   : > { %2143 = vpow2.f32 %v1019_v30 }
 0x182   : > { %v1750_v38 = vsub.f32 %v1686_v11, %v1718_v35  ;;  %v911_v40 = vpop.f32.mrf.mxu2  ;;  %v1110_v44 = vadd.f32 %v1078_v37, %v818_v0 }
 0x183   : > { %v912_v45 = vadd.f32 %v911_v40, %v2629_v41 }
 0x184   : > { %v1781_v46 = vadd.f32 %v1780_v21, %v1750_v38  ;;  %v825_v47 = vpop.f32.mrf.mxu1  ;;  %v1140_v48 = vpack.c.bf16 %v1110_v44, %v1109_v43  ;;  %v641_v43 = vpop.f32.mrf.mxu3  ;;  %v452_v44 = vld [vmem:[#allocation3 + $0x30] sm:$0xff] }
 0x185   : > { %v984_v52 = vmul.f32 0.5, %v912_v45  ;;  %v1624_v49 = vadd.f32 1.0, %v912_v45  ;;  %v2713_v58 = vadd.f32 %v825_v47, %v2627_v39 }
 0x186   : > { %1236 = vmatmul.bf16.gmra.mxu3 %v1140_v48 }
 0x187   : > { %v2144_v53 = vpop.eup %2143  ;;  %v1021_v54 = vmul.f32 1.442695, %v984_v52  ;;  %v1688_v55 = vsub.f32 %v1624_v49, %v1656_v50  ;;  %864 = vmatmul.bf16.gmra.mxu1 %v694_v61  ;;  %953 = vmatmul.bf16.gmra.mxu2 %v694_v61  ;;  %v1657_v18 = vmul.f32 %v2713_v58, %v2713_v58  ;;  %v639_v50 = vadd.f32 %v2546_v6, %v638_v20  ;;  %v453_v61 = vld [vmem:[#allocation3 + $0x38] sm:$0xff] }
 0x188   : > { %v1719_v51 = vmul.f32 %v2144_v53, %v2144_v53  ;;  %v1079_v9 = vmul.f32 %v2144_v53, %v450_v63 }
 0x189   : > { %2145 = vpow2.f32 %v1021_v54 }
 0x18a   : > { %v1751_v59 = vsub.f32 %v1687_v31, %v1719_v51  ;;  %v914_v60 = vpop.f32.mrf.mxu2  ;;  %v1111_v24 = vadd.f32 %v1079_v9, %v2697_v14  ;;  %v695_v31 = vpack.c.bf16 %v676_v2, %v675_v17  ;;  %v361_v51 = vld [vmem:[%s2644_s17 + $0x60] sm:$0xff]  ;;  %v362_v2 = vld [vmem:[%s2644_s17 + $0x68] sm:$0xff] }
 0x18b   : > { %v915_v62 = vadd.f32 %v914_v60, %v2629_v41  ;;  %394 = vst.msk [vmem:[#allocation3 + $0x60] sm:$0xff] %vm381_vm1, %v361_v51 }
 0x18c   : > { %v1782_v0 = vadd.f32 %v1781_v46, %v1751_v59  ;;  %v827_v7 = vpop.f32.mrf.mxu1  ;;  %v637_v46 = vadd.f32 %v2546_v6, %v636_v56  ;;  %v678_v56 = vmax.f32 %v639_v50, 0.0  ;;  %v643_v13 = vpop.f32.mrf.mxu3  ;;  %395 = vst.msk [vmem:[#allocation3 + $0x68] sm:$0xff] %vm381_vm1, %v362_v2  ;;  %v457_v2 = vld [vmem:[#allocation3 + $0x58] sm:$0xff] }
 0x18d   : > { %v985_v4 = vmul.f32 0.5, %v915_v62  ;;  %v1625_v5 = vadd.f32 1.0, %v915_v62  ;;  %v828_v19 = vadd.f32 %v827_v7, %v2627_v39 }
 0x18e   : > { %v677_v62 = vmax.f32 %v637_v46, 0.0 }
 0x18f   : > { %v2146_v10 = vpop.eup %2145  ;;  %v1023_v11 = vmul.f32 1.442695, %v985_v4  ;;  %v1689_v12 = vsub.f32 %v1625_v5, %v1657_v18  ;;  %v1658_v29 = vmul.f32 %v828_v19, %v828_v19 }
 0x190   : > { %v1720_v15 = vmul.f32 %v2146_v10, %v2146_v10  ;;  %v1080_v16 = vmul.f32 %v2146_v10, %v451_v8 }
 0x191   : > { %2147 = vpow2.f32 %v1023_v11 }
 0x192   : > { %v1752_v21 = vsub.f32 %v1688_v55, %v1720_v15  ;;  %v916_v22 = vpop.f32.mrf.mxu2  ;;  %v1112_v25 = vadd.f32 %v1080_v16, %v823_v36 }
 0x193   : > { %v917_v26 = vadd.f32 %v916_v22, %v2629_v41 }
 0x194   : > { %v1783_v27 = vadd.f32 %v1782_v0, %v1752_v21  ;;  %v830_v28 = vpop.f32.mrf.mxu1  ;;  %v1141_v32 = vpack.c.bf16 %v1112_v25, %v1111_v24  ;;  %v454_v24 = vld [vmem:[#allocation3 + $0x40] sm:$0xff]  ;;  %v646_v23 = vpop.f32.mrf.mxu3 }
 0x195   : > { %v986_v42 = vmul.f32 0.5, %v917_v26  ;;  %v1626_v30 = vadd.f32 1.0, %v917_v26  ;;  %v2729_v14 = vadd.f32 %v830_v28, %v2627_v39  ;;  %v642_v26 = vadd.f32 %v2546_v6, %v641_v43 }
 0x196   : > { %1241 = vmatmul.bf16.gmra.mxu3 %v1141_v32 }
 0x197   : > { %v2148_v33 = vpop.eup %2147  ;;  %v1025_v35 = vmul.f32 1.442695, %v986_v42  ;;  %v1690_v37 = vsub.f32 %v1626_v30, %v1658_v29  ;;  %869 = vmatmul.bf16.gmra.mxu1 %v695_v31  ;;  %958 = vmatmul.bf16.gmra.mxu2 %v695_v31  ;;  %v1659_v48 = vmul.f32 %v2729_v14, %v2729_v14  ;;  %v455_v30 = vld [vmem:[#allocation3 + $0x48] sm:$0xff] }
 0x198   : > { %v1721_v34 = vmul.f32 %v2148_v33, %v2148_v33  ;;  %v1081_v53 = vmul.f32 %v2148_v33, %v452_v44 }
 0x199   : > { %2149 = vpow2.f32 %v1025_v35 }
 0x19a   : > { %v1753_v36 = vsub.f32 %v1689_v12, %v1721_v34  ;;  %v919_v38 = vpop.f32.mrf.mxu2  ;;  %v1113_v7 = vadd.f32 %v1081_v53, %v2713_v58  ;;  %v696_v12 = vpack.c.bf16 %v678_v56, %v677_v62  ;;  %v363_v34 = vld [vmem:[%s2644_s17 + $0x70] sm:$0xff] }
 0x19b   : > { %v920_v40 = vadd.f32 %v919_v38, %v2629_v41  ;;  %396 = vst.msk [vmem:[#allocation3 + $0x70] sm:$0xff] %vm381_vm1, %v363_v34 }
 0x19c   : > { %v1784_v45 = vadd.f32 %v1783_v27, %v1753_v36  ;;  %v832_v47 = vpop.f32.mrf.mxu1  ;;  %v644_v27 = vadd.f32 %v2546_v6, %v643_v13  ;;  %v679_v36 = vmax.f32 %v642_v26, 0.0  ;;  %v2097_v13 = vld [vmem:[%s3015_s2 + $0x110] sm:$0xf0] }
 0x19d   : > { %v987_v52 = vmul.f32 0.5, %v920_v40  ;;  %v1627_v49 = vadd.f32 1.0, %v920_v40  ;;  %v833_v63 = vadd.f32 %v832_v47, %v2627_v39 }
 0x19e   : > { %v680_v40 = vmax.f32 %v644_v27, 0.0 }
 0x19f   : > { %v2150_v54 = vpop.eup %2149  ;;  %v1027_v55 = vmul.f32 1.442695, %v987_v52  ;;  %v1691_v57 = vsub.f32 %v1627_v49, %v1659_v48  ;;  %v1660_v9 = vmul.f32 %v833_v63, %v833_v63 }
 0x1a0   : > { %v1722_v59 = vmul.f32 %v2150_v54, %v2150_v54  ;;  %v1082_v60 = vmul.f32 %v2150_v54, %v453_v61  ;;  %v697_v53 = vpack.c.bf16 %v680_v40, %v679_v36  ;;  %v2055_v54 = vld [vmem:[%s3015_s2 + $0x128] sm:$0xf]  ;;  %v2047_v36 = vld [vmem:[%s3015_s2 + $0xd8] sm:$0xf] }
 0x1a1   : > { %2151 = vpow2.f32 %v1027_v55  ;;  %v2098_v55 = vld [vmem:[%s3015_s2 + $0x138] sm:$0xf0] }
 0x1a2   : > { %v1754_v0 = vsub.f32 %v1690_v37, %v1722_v59  ;;  %v921_v1 = vpop.f32.mrf.mxu2  ;;  %v1114_v18 = vadd.f32 %v1082_v60, %v828_v19 }
 0x1a3   : > { %v922_v3 = vadd.f32 %v921_v1, %v2629_v41 }
 0x1a4   : > { %v1785_v4 = vadd.f32 %v1784_v45, %v1754_v0  ;;  %v835_v5 = vpop.f32.mrf.mxu1  ;;  %v1142_v8 = vpack.c.bf16 %v1114_v18, %v1113_v7  ;;  %v648_v7 = vpop.f32.mrf.mxu3 }
 0x1a5   : > { %v988_v10 = vmul.f32 0.5, %v922_v3  ;;  %v1628_v11 = vadd.f32 1.0, %v922_v3  ;;  %v2744_v19 = vadd.f32 %v835_v5, %v2627_v39  ;;  %v456_v5 = vld [vmem:[#allocation3 + $0x50] sm:$0xff] }
 0x1a6   : > { %1246 = vmatmul.bf16.gmra.mxu3 %v1142_v8 }
 0x1a7   : > { %v2152_v15 = vpop.eup %2151  ;;  %v1029_v16 = vmul.f32 1.442695, %v988_v10  ;;  %v1692_v17 = vsub.f32 %v1628_v11, %v1660_v9  ;;  %874 = vmatmul.bf16.gmra.mxu1 %v696_v12  ;;  %963 = vmatmul.bf16.gmra.mxu2 %v696_v12  ;;  %v1661_v32 = vmul.f32 %v2744_v19, %v2744_v19  ;;  %v647_v9 = vadd.f32 %v2546_v6, %v646_v23  ;;  %v2051_v12 = vld [vmem:[%s3015_s2 + $0x100] sm:$0xf] }
 0x1a8   : > { %v1723_v58 = vmul.f32 %v2152_v15, %v2152_v15  ;;  %v1083_v31 = vmul.f32 %v2152_v15, %v454_v24  ;;  %v649_v10 = vadd.f32 %v2546_v6, %v648_v7  ;;  %v365_v24 = vld [vmem:[%s2644_s17 + $0x80] sm:$0xff] }
 0x1a9   : > { %2153 = vpow2.f32 %v1029_v16  ;;  %398 = vst.msk [vmem:[#allocation3 + $0x80] sm:$0xff] %vm381_vm1, %v365_v24 }
 0x1aa   : > { %v1755_v20 = vsub.f32 %v1691_v57, %v1723_v58  ;;  %v924_v21 = vpop.f32.mrf.mxu2  ;;  %v1115_v47 = vadd.f32 %v1083_v31, %v2729_v14  ;;  %v2056_v14 = vor.u32 %v2098_v55, %v2055_v54  ;;  %v2052_v58 = vor.u32 %v2097_v13, %v2051_v12  ;;  %v458_v54 = vld [vmem:[#allocation3 + $0x60] sm:$0xff] }
 0x1ab   : > { %v925_v22 = vadd.f32 %v924_v21, %v2629_v41  ;;  %v682_v27 = vmax.f32 %v649_v10, 0.0 }
 0x1ac   : > { %v1786_v25 = vadd.f32 %v1785_v4, %v1755_v20  ;;  %v837_v28 = vpop.f32.mrf.mxu1  ;;  %1428 = vmatpush.bf16.msrb.mxu0 %v2056_v14 }
 0x1ad   : > { %v989_v29 = vmul.f32 0.5, %v925_v22  ;;  %v1629_v42 = vadd.f32 1.0, %v925_v22  ;;  %v838_v43 = vadd.f32 %v837_v28, %v2627_v39 }
 0x1af   : > { %v2154_v33 = vpop.eup %2153  ;;  %v1031_v35 = vmul.f32 1.442695, %v989_v29  ;;  %v1693_v37 = vsub.f32 %v1629_v42, %v1661_v32  ;;  %v1662_v57 = vmul.f32 %v838_v43, %v838_v43 }
 0x1b0   : > { %v1724_v38 = vmul.f32 %v2154_v33, %v2154_v33  ;;  %v1084_v44 = vmul.f32 %v2154_v33, %v455_v30  ;;  %1429 = vmatpush.bf16.msrb.mxu0 %v2052_v58  ;;  %v2039_v58 = vld [vmem:[%s3015_s2 + $0x88] sm:$0xf] }
 0x1b1   : > { %2155 = vpow2.f32 %v1031_v35 }
 0x1b2   : > { %v1756_v45 = vsub.f32 %v1692_v17, %v1724_v38  ;;  %v926_v46 = vpop.f32.mrf.mxu2  ;;  %v1116_v48 = vadd.f32 %v1084_v44, %v833_v63  ;;  %v364_v63 = vld [vmem:[%s2644_s17 + $0x78] sm:$0xff]  ;;  %v2096_v38 = vld [vmem:[%s3015_s2 + $0xe8] sm:$0xf0] }
 0x1b3   : > { %v927_v50 = vadd.f32 %v926_v46, %v2629_v41  ;;  %397 = vst.msk [vmem:[#allocation3 + $0x78] sm:$0xff] %vm381_vm1, %v364_v63 }
 0x1b4   : > { %v1787_v52 = vadd.f32 %v1786_v25, %v1756_v45  ;;  %v840_v49 = vpop.f32.mrf.mxu1  ;;  %v1143_v61 = vpack.c.bf16 %v1116_v48, %v1115_v47  ;;  %v681_v25 = vmax.f32 %v647_v9, 0.0  ;;  %v366_v48 = vld [vmem:[%s2644_s17 + $0x88] sm:$0xff] }
 0x1b5   : > { %v990_v51 = vmul.f32 0.5, %v927_v50  ;;  %v1630_v59 = vadd.f32 1.0, %v927_v50  ;;  %v2765_v1 = vadd.f32 %v840_v49, %v2627_v39  ;;  %399 = vst.msk [vmem:[#allocation3 + $0x88] sm:$0xff] %vm381_vm1, %v366_v48 }
 0x1b6   : > { %1251 = vmatmul.bf16.gmra.mxu3 %v1143_v61  ;;  %v698_v34 = vpack.c.bf16 %v682_v27, %v681_v25  ;;  %v368_v27 = vld [vmem:[%s2644_s17 + $0x98] sm:$0xff] }
 0x1b7   : > { %v2156_v60 = vpop.eup %2155  ;;  %v1033_v62 = vmul.f32 1.442695, %v990_v51  ;;  %v1694_v56 = vsub.f32 %v1630_v59, %v1662_v57  ;;  %879 = vmatmul.bf16.gmra.mxu1 %v697_v53  ;;  %968 = vmatmul.bf16.gmra.mxu2 %v697_v53  ;;  %v1663_v15 = vmul.f32 %v2765_v1, %v2765_v1  ;;  %v2043_v51 = vld [vmem:[%s3015_s2 + $0xb0] sm:$0xf]  ;;  %v2095_v59 = vld [vmem:[%s3015_s2 + $0xc0] sm:$0xf0] }
 0x1b8   : > { %v1725_v0 = vmul.f32 %v2156_v60, %v2156_v60  ;;  %v1085_v20 = vmul.f32 %v2156_v60, %v456_v5  ;;  %v2044_v63 = vor.u32 %v2095_v59, %v2043_v51  ;;  %401 = vst.msk [vmem:[#allocation3 + $0x98] sm:$0xff] %vm381_vm1, %v368_v27 }
 0x1b9   : > { %2157 = vpow2.f32 %v1033_v62 }
 0x1ba   : > { %v1757_v18 = vsub.f32 %v1693_v37, %v1725_v0  ;;  %v929_v3 = vpop.f32.mrf.mxu2  ;;  %v1117_v30 = vadd.f32 %v1085_v20, %v2744_v19  ;;  %v2048_v19 = vor.u32 %v2096_v38, %v2047_v36  ;;  %v2094_v20 = vld [vmem:[%s3015_s2 + $0x98] sm:$0xf0]  ;;  %v2829_v38 = vld [vmem:[%s3016_s3 + $0x3] ss:$0 sm:$0xff] }
 0x1bb   : > { %v930_v4 = vadd.f32 %v929_v3, %v2629_v41  ;;  %v2040_v24 = vor.u32 %v2094_v20, %v2039_v58 }
 0x1bc   : > { %v1788_v8 = vadd.f32 %v1787_v52, %v1757_v18  ;;  %v842_v11 = vpop.f32.mrf.mxu1  ;;  %1430 = vmatpush.bf16.msrb.mxu0 %v2048_v19  ;;  %v461_v19 = vld [vmem:[#allocation3 + $0x78] sm:$0xff] }
 0x1bd   : > { %v991_v16 = vmul.f32 0.5, %v930_v4  ;;  %v1631_v17 = vadd.f32 1.0, %v930_v4  ;;  %v843_v32 = vadd.f32 %v842_v11, %v2627_v39  ;;  %v367_v4 = vld [vmem:[%s2644_s17 + $0x90] sm:$0xff] }
 0x1be   : > { %400 = vst.msk [vmem:[#allocation3 + $0x90] sm:$0xff] %vm381_vm1, %v367_v4 }
 0x1bf   : > { %v2158_v21 = vpop.eup %2157  ;;  %v1035_v22 = vmul.f32 1.442695, %v991_v16  ;;  %v1695_v6 = vsub.f32 %v1631_v17, %v1663_v15  ;;  %v1664_v40 = vmul.f32 %v843_v32, %v843_v32 }
 0x1c0   : > { %v1726_v26 = vmul.f32 %v2158_v21, %v2158_v21  ;;  %v1086_v28 = vmul.f32 %v2158_v21, %v457_v2  ;;  %1431 = vmatpush.bf16.msrb.mxu0 %v2044_v63  ;;  %v2027_v63 = vld [vmem:[%s3015_s2 + $0x10] sm:$0xf] }
 0x1c1   : > { %2159 = vpow2.f32 %v1035_v22 }
 0x1c2   : > { %v1758_v29 = vsub.f32 %v1694_v56, %v1726_v26  ;;  %v931_v42 = vpop.f32.mrf.mxu2  ;;  %v1118_v31 = vadd.f32 %v1086_v28, %v838_v43  ;;  %v459_v56 = vld [vmem:[#allocation3 + $0x68] sm:$0xff] }
 0x1c3   : > { %v932_v33 = vadd.f32 %v931_v42, %v2629_v41 }
 0x1c4   : > { %v1789_v35 = vadd.f32 %v1788_v8, %v1758_v29  ;;  %v845_v37 = vpop.f32.mrf.mxu1  ;;  %v1144_v23 = vpack.c.bf16 %v1118_v31, %v1117_v30  ;;  %1432 = vmatpush.bf16.msrb.mxu0 %v2040_v24  ;;  %v2035_v31 = vld [vmem:[%s3015_s2 + $0x60] sm:$0xf] }
 0x1c5   : > { %v992_v44 = vmul.f32 0.5, %v932_v33  ;;  %v1632_v45 = vadd.f32 1.0, %v932_v33  ;;  %v2792_v52 = vadd.f32 %v845_v37, %v2627_v39  ;;  %v2093_v33 = vld [vmem:[%s3015_s2 + $0x70] sm:$0xf0]  ;;  %v462_v24 = vld [vmem:[#allocation3 + $0x80] sm:$0xff] }
 0x1c6   : > { %1256 = vmatmul.bf16.gmra.mxu3 %v1144_v23  ;;  %v460_v37 = vld [vmem:[#allocation3 + $0x70] sm:$0xff]  ;;  %v2036_v23 = vor.u32 %v2093_v33, %v2035_v31 }
 0x1c7   : > { %v2160_v43 = vpop.eup %2159  ;;  %v1037_v46 = vmul.f32 1.442695, %v992_v44  ;;  %v1696_v47 = vsub.f32 %v1632_v45, %v1664_v40  ;;  %884 = vmatmul.bf16.gmra.mxu1 %v698_v34  ;;  %973 = vmatmul.bf16.gmra.mxu2 %v698_v34  ;;  %v1665_v14 = vmul.f32 %v2792_v52, %v2792_v52 }
 0x1c8   : > { %v1727_v50 = vmul.f32 %v2160_v43, %v2160_v43  ;;  %v1087_v0 = vmul.f32 %v2160_v43, %v458_v54  ;;  %1433 = vmatpush.bf16.msrb.mxu0 %v2036_v23 }
 0x1c9   : > { %2161 = vpow2.f32 %v1037_v46  ;;  %v2031_v46 = vld [vmem:[%s3015_s2 + $0x38] sm:$0xf] }
 0x1ca   : > { %v1759_v49 = vsub.f32 %v1695_v6, %v1727_v50  ;;  %v934_v61 = vpop.f32.mrf.mxu2  ;;  %v1119_v12 = vadd.f32 %v1087_v0, %v2765_v1  ;;  %v2091_v0 = vld [vmem:[%s3015_s2 + $0x20] sm:$0xf0] }
 0x1cb   : > { %v935_v53 = vadd.f32 %v934_v61, %v2629_v41 }
 0x1cc   : > { %v1790_v55 = vadd.f32 %v1789_v35, %v1759_v49  ;;  %v847_v57 = vpop.f32.mrf.mxu1 }
 0x1cd   : > { %v993_v60 = vmul.f32 0.5, %v935_v53  ;;  %v1633_v62 = vadd.f32 1.0, %v935_v53  ;;  %v848_v9 = vadd.f32 %v847_v57, %v2627_v39  ;;  %v369_v53 = vld [vmem:[%s2644_s17 + $0xa0] sm:$0xff] }
 0x1ce   : > { %402 = vst.msk [vmem:[#allocation3 + $0xa0] sm:$0xff] %vm381_vm1, %v369_v53 }
 0x1cf   : > { %v2162_v7 = vpop.eup %2161  ;;  %v1039_v18 = vmul.f32 1.442695, %v993_v60  ;;  %v1697_v3 = vsub.f32 %v1633_v62, %v1665_v14  ;;  %v1666_v21 = vmul.f32 %v848_v9, %v848_v9 }
 0x1d0   : > { %v1728_v5 = vmul.f32 %v2162_v7, %v2162_v7  ;;  %v1088_v8 = vmul.f32 %v2162_v7, %v459_v56 }
 0x1d1   : > { %2163 = vpow2.f32 %v1039_v18 }
 0x1d2   : > { %v1760_v10 = vsub.f32 %v1696_v47, %v1728_v5  ;;  %v936_v11 = vpop.f32.mrf.mxu2  ;;  %v1120_v13 = vadd.f32 %v1088_v8, %v843_v32  ;;  %v2092_v47 = vld [vmem:[%s3015_s2 + $0x48] sm:$0xf0] }
 0x1d3   : > { %v937_v15 = vadd.f32 %v936_v11, %v2629_v41  ;;  %v2032_v61 = vor.u32 %v2092_v47, %v2031_v46 }
 0x1d4   : > { %v1791_v16 = vadd.f32 %v1790_v55, %v1760_v10  ;;  %v850_v17 = vpop.f32.mrf.mxu1  ;;  %v1145_v2 = vpack.c.bf16 %v1120_v13, %v1119_v12 }
 0x1d5   : > { %v994_v22 = vmul.f32 0.5, %v937_v15  ;;  %v1634_v6 = vadd.f32 1.0, %v937_v15  ;;  %v2817_v32 = vadd.f32 %v850_v17, %v2627_v39  ;;  %1434 = vmatpush.bf16.msrb.mxu0 %v2032_v61 }
 0x1d6   : > { %1261 = vmatmul.bf16.gmra.mxu3 %v1145_v2  ;;  %v370_v2 = vld [vmem:[%s2644_s17 + $0xa8] sm:$0xff] }
 0x1d7   : > { %v2164_v1 = vpop.eup %2163  ;;  %v1041_v25 = vmul.f32 1.442695, %v994_v22  ;;  %v1698_v26 = vsub.f32 %v1634_v6, %v1666_v21  ;;  %v1667_v40 = vmul.f32 %v2817_v32, %v2817_v32  ;;  %403 = vst.msk [vmem:[#allocation3 + $0xa8] sm:$0xff] %vm381_vm1, %v370_v2 }
 0x1d8   : > { %v1729_v28 = vmul.f32 %v2164_v1, %v2164_v1  ;;  %v1089_v43 = vmul.f32 %v2164_v1, %v460_v37 }
 0x1d9   : > { %2165 = vpow2.f32 %v1041_v25 }
 0x1da   : > { %v1761_v42 = vsub.f32 %v1697_v3, %v1729_v28  ;;  %v939_v30 = vpop.f32.mrf.mxu2  ;;  %v1121_v62 = vadd.f32 %v1089_v43, %v2792_v52  ;;  %v2028_v3 = vor.u32 %v2091_v0, %v2027_v63 }
 0x1db   : > { %v1232_v29 = vpop.f32.mrf.mxu3  ;;  %v940_v35 = vadd.f32 %v939_v30, %v2629_v41 }
 0x1dc   : > { %v1792_v34 = vadd.f32 %v1791_v16, %v1761_v42  ;;  %v852_v36 = vpop.f32.mrf.mxu1  ;;  %v1233_v57 = vadd.f32 %v2829_v38, %v1232_v29  ;;  %1435 = vmatpush.bf16.msrb.mxu0 %v2028_v3  ;;  %v463_v29 = vld [vmem:[#allocation3 + $0x88] sm:$0xff] }
 0x1dd   : > { %v995_v44 = vmul.f32 0.5, %v940_v35  ;;  %v1635_v45 = vadd.f32 1.0, %v940_v35  ;;  %v853_v51 = vadd.f32 %v852_v36, %v2627_v39  ;;  %v371_v35 = vld [vmem:[%s2644_s17 + $0xb0] sm:$0xff] }
 0x1de   : > { %v1312_v10 = vmax.f32 %v1233_v57, 0.0  ;;  %404 = vst.msk [vmem:[#allocation3 + $0xb0] sm:$0xff] %vm381_vm1, %v371_v35 }
 0x1df   : > { %v2166_v48 = vpop.eup %2165  ;;  %v1043_v50 = vmul.f32 1.442695, %v995_v44  ;;  %v1699_v49 = vsub.f32 %v1635_v45, %v1667_v40 }
 0x1e0   : > { %v1730_v54 = vmul.f32 %v2166_v48, %v2166_v48  ;;  %v1090_v55 = vmul.f32 %v2166_v48, %v461_v19 }
 0x1e1   : > { %2167 = vpow2.f32 %v1043_v50 }
 0x1e2   : > { %v1762_v14 = vsub.f32 %v1698_v26, %v1730_v54  ;;  %v941_v60 = vpop.f32.mrf.mxu2  ;;  %v1122_v56 = vadd.f32 %v1090_v55, %v848_v9  ;;  %v1668_v9 = vmul.f32 %v853_v51, %v853_v51  ;;  %v372_v55 = vld [vmem:[%s2644_s17 + $0xb8] sm:$0xff] }
 0x1e3   : > { %v1234_v59 = vpop.f32.mrf.mxu3  ;;  %v942_v18 = vadd.f32 %v941_v60, %v2629_v41  ;;  %405 = vst.msk [vmem:[#allocation3 + $0xb8] sm:$0xff] %vm381_vm1, %v372_v55  ;;  %v464_v60 = vld [vmem:[#allocation3 + $0x90] sm:$0xff] }
 0x1e4   : > { %v1235_v7 = vadd.f32 %v2829_v38, %v1234_v59  ;;  %v1793_v4 = vadd.f32 %v1792_v34, %v1762_v14  ;;  %v855_v5 = vpop.f32.mrf.mxu1  ;;  %v1146_v8 = vpack.c.bf16 %v1122_v56, %v1121_v62 }
 0x1e5   : > { %v996_v11 = vmul.f32 0.5, %v942_v18  ;;  %v1636_v12 = vadd.f32 1.0, %v942_v18  ;;  %v2855_v20 = vadd.f32 %v855_v5, %v2627_v39  ;;  %v465_v18 = vld [vmem:[#allocation3 + $0x98] sm:$0xff] }
 0x1e6   : > { %v1313_v52 = vmax.f32 %v1235_v7, 0.0  ;;  %1266 = vmatmul.bf16.gmra.mxu3 %v1146_v8 }
 0x1e7   : > { %v2168_v15 = vpop.eup %2167  ;;  %v1045_v16 = vmul.f32 1.442695, %v996_v11  ;;  %v1700_v17 = vsub.f32 %v1636_v12, %v1668_v9  ;;  %v1669_v26 = vmul.f32 %v2855_v20, %v2855_v20 }
 0x1e8   : > { %v1344_v13 = vpack.c.bf16 %v1313_v52, %v1312_v10  ;;  %v1731_v58 = vmul.f32 %v2168_v15, %v2168_v15  ;;  %v1091_v42 = vmul.f32 %v2168_v15, %v462_v24  ;;  %v373_v10 = vld [vmem:[%s2644_s17 + $0xc0] sm:$0xff] }
 0x1e9   : > { %2169 = vpow2.f32 %v1045_v16  ;;  %406 = vst.msk [vmem:[#allocation3 + $0xc0] sm:$0xff] %vm381_vm1, %v373_v10  ;;  %v376_v10 = vld [vmem:[%s2644_s17 + $0xd8] sm:$0xff] }
 0x1ea   : > { %1436 = vmatmul.bf16.vlgmr.msrb.gmra.mxu0 %v1344_v13  ;;  %v1763_v21 = vsub.f32 %v1699_v49, %v1731_v58  ;;  %v944_v22 = vpop.f32.mrf.mxu2  ;;  %v1123_v44 = vadd.f32 %v1091_v42, %v2817_v32  ;;  %409 = vst.msk [vmem:[#allocation3 + $0xd8] sm:$0xff] %vm381_vm1, %v376_v10 }
 0x1eb   : > { %v945_v6 = vadd.f32 %v944_v22, %v2629_v41 }
 0x1ec   : > { %v1794_v1 = vadd.f32 %v1793_v4, %v1763_v21  ;;  %v857_v25 = vpop.f32.mrf.mxu1 }
 0x1ed   : > { %v997_v27 = vmul.f32 0.5, %v945_v6  ;;  %v1637_v28 = vadd.f32 1.0, %v945_v6  ;;  %v858_v34 = vadd.f32 %v857_v25, %v2627_v39 }
 0x1ef   : > { %v2170_v30 = vpop.eup %2169  ;;  %v1047_v31 = vmul.f32 1.442695, %v997_v27  ;;  %v1701_v33 = vsub.f32 %v1637_v28, %v1669_v26  ;;  %v1670_v48 = vmul.f32 %v858_v34, %v858_v34  ;;  %v374_v27 = vld [vmem:[%s2644_s17 + $0xc8] sm:$0xff] }
 0x1f0   : > { %v1732_v37 = vmul.f32 %v2170_v30, %v2170_v30  ;;  %v1092_v23 = vmul.f32 %v2170_v30, %v463_v29  ;;  %407 = vst.msk [vmem:[#allocation3 + $0xc8] sm:$0xff] %vm381_vm1, %v374_v27 }
 0x1f1   : > { %2171 = vpow2.f32 %v1047_v31 }
 0x1f2   : > { %v1764_v36 = vsub.f32 %v1700_v17, %v1732_v37  ;;  %v946_v40 = vpop.f32.mrf.mxu2  ;;  %v1124_v45 = vadd.f32 %v1092_v23, %v853_v51 }
 0x1f3   : > { %v947_v19 = vadd.f32 %v946_v40, %v2629_v41  ;;  %v467_v40 = vld [vmem:[#allocation3 + $0xa8] sm:$0xff] }
 0x1f4   : > { %v1795_v43 = vadd.f32 %v1794_v1, %v1764_v36  ;;  %v860_v46 = vpop.f32.mrf.mxu1  ;;  %v1147_v47 = vpack.c.bf16 %v1124_v45, %v1123_v44 }
 0x1f5   : > { %v998_v50 = vmul.f32 0.5, %v947_v19  ;;  %v1638_v49 = vadd.f32 1.0, %v947_v19  ;;  %v2868_v32 = vadd.f32 %v860_v46, %v2627_v39  ;;  %v375_v46 = vld [vmem:[%s2644_s17 + $0xd0] sm:$0xff] }
 0x1f6   : > { %1271 = vmatmul.bf16.gmra.mxu3 %v1147_v47  ;;  %408 = vst.msk [vmem:[#allocation3 + $0xd0] sm:$0xff] %vm381_vm1, %v375_v46 }
 0x1f7   : > { %v2172_v61 = vpop.eup %2171  ;;  %v1049_v53 = vmul.f32 1.442695, %v998_v50  ;;  %v1702_v54 = vsub.f32 %v1638_v49, %v1670_v48  ;;  %v1671_v63 = vmul.f32 %v2868_v32, %v2868_v32 }
 0x1f8   : > { %v1733_v57 = vmul.f32 %v2172_v61, %v2172_v61  ;;  %v1093_v3 = vmul.f32 %v2172_v61, %v464_v60 }
 0x1f9   : > { %2173 = vpow2.f32 %v1049_v53 }
 0x1fa   : > { %v1765_v51 = vsub.f32 %v1701_v33, %v1733_v57  ;;  %v949_v59 = vpop.f32.mrf.mxu2  ;;  %v1125_v15 = vadd.f32 %v1093_v3, %v2855_v20  ;;  %v466_v33 = vld [vmem:[#allocation3 + $0xa0] sm:$0xff] }
 0x1fb   : > { %v950_v14 = vadd.f32 %v949_v59, %v2629_v41 }
 0x1fc   : > { %v1796_v62 = vadd.f32 %v1795_v43, %v1765_v51  ;;  %v862_v56 = vpop.f32.mrf.mxu1 }
 0x1fd   : > { %v999_v0 = vmul.f32 0.5, %v950_v14  ;;  %v1639_v7 = vadd.f32 1.0, %v950_v14  ;;  %v863_v11 = vadd.f32 %v862_v56, %v2627_v39 }
 0x1ff   : > { %v2174_v4 = vpop.eup %2173  ;;  %v1051_v5 = vmul.f32 1.442695, %v999_v0  ;;  %v1703_v8 = vsub.f32 %v1639_v7, %v1671_v63  ;;  %v1672_v22 = vmul.f32 %v863_v11, %v863_v11 }
 0x200   : > { %v1734_v52 = vmul.f32 %v2174_v4, %v2174_v4  ;;  %v1094_v9 = vmul.f32 %v2174_v4, %v465_v18 }
 0x201   : > { %2175 = vpow2.f32 %v1051_v5 }
 0x202   : > { %v1766_v12 = vsub.f32 %v1702_v54, %v1734_v52  ;;  %v951_v13 = vpop.f32.mrf.mxu2  ;;  %v1126_v16 = vadd.f32 %v1094_v9, %v858_v34 }
 0x203   : > { %v952_v17 = vadd.f32 %v951_v13, %v2629_v41 }
 0x204   : > { %v1797_v2 = vadd.f32 %v1796_v62, %v1766_v12  ;;  %v865_v58 = vpop.f32.mrf.mxu1  ;;  %v1148_v21 = vpack.c.bf16 %v1126_v16, %v1125_v15  ;;  %v468_v15 = vld [vmem:[#allocation3 + $0xb0] sm:$0xff] }
 0x205   : > { %v1000_v6 = vmul.f32 0.5, %v952_v17  ;;  %v1640_v24 = vadd.f32 1.0, %v952_v17  ;;  %v2881_v20 = vadd.f32 %v865_v58, %v2627_v39 }
 0x206   : > { %1276 = vmatmul.bf16.gmra.mxu3 %v1148_v21 }
 0x207   : > { %v2176_v1 = vpop.eup %2175  ;;  %v1053_v25 = vmul.f32 1.442695, %v1000_v6  ;;  %v1704_v26 = vsub.f32 %v1640_v24, %v1672_v22  ;;  %v1673_v23 = vmul.f32 %v2881_v20, %v2881_v20  ;;  %v469_v22 = vld [vmem:[#allocation3 + $0xb8] sm:$0xff] }
 0x208   : > { %v1735_v28 = vmul.f32 %v2176_v1, %v2176_v1  ;;  %v1095_v44 = vmul.f32 %v2176_v1, %v466_v33 }
 0x209   : > { %2177 = vpow2.f32 %v1053_v25  ;;  %v1237_v29 = vpop.f32.mrf.mxu3 }
 0x20a   : > { %v1767_v42 = vsub.f32 %v1703_v8, %v1735_v28  ;;  %v954_v30 = vpop.f32.mrf.mxu2  ;;  %v1238_v48 = vadd.f32 %v2829_v38, %v1237_v29  ;;  %v1127_v57 = vadd.f32 %v1095_v44, %v2868_v32 }
 0x20b   : > { %v955_v31 = vadd.f32 %v954_v30, %v2629_v41 }
 0x20c   : > { %v1798_v35 = vadd.f32 %v1797_v2, %v1767_v42  ;;  %v867_v37 = vpop.f32.mrf.mxu1  ;;  %v1314_v60 = vmax.f32 %v1238_v48, 0.0 }
 0x20d   : > { %v1001_v34 = vmul.f32 0.5, %v955_v31  ;;  %v1641_v36 = vadd.f32 1.0, %v955_v31  ;;  %v868_v49 = vadd.f32 %v867_v37, %v2627_v39 }
 0x20f   : > { %v2178_v45 = vpop.eup %2177  ;;  %v1055_v19 = vmul.f32 1.442695, %v1001_v34  ;;  %v1705_v43 = vsub.f32 %v1641_v36, %v1673_v23  ;;  %v1674_v0 = vmul.f32 %v868_v49, %v868_v49 }
 0x210   : > { %v1736_v47 = vmul.f32 %v2178_v45, %v2178_v45  ;;  %v1096_v50 = vmul.f32 %v2178_v45, %v467_v40 }
 0x211   : > { %2179 = vpow2.f32 %v1055_v19  ;;  %v1239_v61 = vpop.f32.mrf.mxu3 }
 0x212   : > { %v1768_v53 = vsub.f32 %v1704_v26, %v1736_v47  ;;  %v1240_v54 = vadd.f32 %v2829_v38, %v1239_v61  ;;  %v956_v55 = vpop.f32.mrf.mxu2  ;;  %v1128_v51 = vadd.f32 %v1096_v50, %v863_v11  ;;  %v377_v26 = vld [vmem:[%s2644_s17 + $0xe0] sm:$0xff] }
 0x213   : > { %v957_v59 = vadd.f32 %v956_v55, %v2629_v41  ;;  %410 = vst.msk [vmem:[#allocation3 + $0xe0] sm:$0xff] %vm381_vm1, %v377_v26 }
 0x214   : > { %v1799_v14 = vadd.f32 %v1798_v35, %v1768_v53  ;;  %v1315_v62 = vmax.f32 %v1240_v54, 0.0  ;;  %v870_v56 = vpop.f32.mrf.mxu1  ;;  %v1149_v63 = vpack.c.bf16 %v1128_v51, %v1127_v57  ;;  %v378_v54 = vld [vmem:[%s2644_s17 + $0xe8] sm:$0xff] }
 0x215   : > { %v1002_v7 = vmul.f32 0.5, %v957_v59  ;;  %v1642_v18 = vadd.f32 1.0, %v957_v59  ;;  %v2896_v32 = vadd.f32 %v870_v56, %v2627_v39  ;;  %411 = vst.msk [vmem:[#allocation3 + $0xe8] sm:$0xff] %vm381_vm1, %v378_v54 }
 0x216   : > { %1281 = vmatmul.bf16.gmra.mxu3 %v1149_v63  ;;  %v1345_v3 = vpack.c.bf16 %v1315_v62, %v1314_v60 }
 0x217   : > { %v2180_v4 = vpop.eup %2179  ;;  %v1057_v5 = vmul.f32 1.442695, %v1002_v7  ;;  %v1706_v8 = vsub.f32 %v1642_v18, %v1674_v0  ;;  %v1675_v2 = vmul.f32 %v2896_v32, %v2896_v32  ;;  %v471_v7 = vld [vmem:[#allocation3 + $0xc8] sm:$0xff] }
 0x218   : > { %v1737_v52 = vmul.f32 %v2180_v4, %v2180_v4  ;;  %1441 = vmatmul.bf16.gmra.mxu0 %v1345_v3  ;;  %v1097_v6 = vmul.f32 %v2180_v4, %v468_v15 }
 0x219   : > { %2181 = vpow2.f32 %v1057_v5  ;;  %v1242_v9 = vpop.f32.mrf.mxu3 }
 0x21a   : > { %v1769_v11 = vsub.f32 %v1705_v43, %v1737_v52  ;;  %v959_v12 = vpop.f32.mrf.mxu2  ;;  %v1243_v28 = vadd.f32 %v2829_v38, %v1242_v9  ;;  %v1129_v37 = vadd.f32 %v1097_v6, %v2881_v20 }
 0x21b   : > { %v960_v13 = vadd.f32 %v959_v12, %v2629_v41 }
 0x21c   : > { %v1800_v16 = vadd.f32 %v1799_v14, %v1769_v11  ;;  %v872_v17 = vpop.f32.mrf.mxu1  ;;  %v1316_v40 = vmax.f32 %v1243_v28, 0.0  ;;  %v470_v14 = vld [vmem:[#allocation3 + $0xc0] sm:$0xff] }
 0x21d   : > { %v1003_v58 = vmul.f32 0.5, %v960_v13  ;;  %v1643_v21 = vadd.f32 1.0, %v960_v13  ;;  %v873_v42 = vadd.f32 %v872_v17, %v2627_v39 }
 0x21f   : > { %v2182_v24 = vpop.eup %2181  ;;  %v1059_v1 = vmul.f32 1.442695, %v1003_v58  ;;  %v1707_v25 = vsub.f32 %v1643_v21, %v1675_v2  ;;  %v1676_v43 = vmul.f32 %v873_v42, %v873_v42 }
 0x220   : > { %v1738_v27 = vmul.f32 %v2182_v24, %v2182_v24  ;;  %v1098_v29 = vmul.f32 %v2182_v24, %v469_v22 }
 0x221   : > { %2183 = vpow2.f32 %v1059_v1  ;;  %v1244_v30 = vpop.f32.mrf.mxu3 }
 0x222   : > { %v1770_v31 = vsub.f32 %v1706_v8, %v1738_v27  ;;  %v1245_v33 = vadd.f32 %v2829_v38, %v1244_v30  ;;  %v961_v35 = vpop.f32.mrf.mxu2  ;;  %v1130_v23 = vadd.f32 %v1098_v29, %v868_v49  ;;  %v379_v8 = vld [vmem:[%s2644_s17 + $0xf0] sm:$0xff] }
 0x223   : > { %v962_v34 = vadd.f32 %v961_v35, %v2629_v41  ;;  %412 = vst.msk [vmem:[#allocation3 + $0xf0] sm:$0xff] %vm381_vm1, %v379_v8 }
 0x224   : > { %v1801_v36 = vadd.f32 %v1800_v16, %v1770_v31  ;;  %v1317_v44 = vmax.f32 %v1245_v33, 0.0  ;;  %v875_v45 = vpop.f32.mrf.mxu1  ;;  %v1150_v19 = vpack.c.bf16 %v1130_v23, %v1129_v37  ;;  %v380_v33 = vld [vmem:[%s2644_s17 + $0xf8] sm:$0xff] }
 0x225   : > { %v1004_v46 = vmul.f32 0.5, %v962_v34  ;;  %v1644_v47 = vadd.f32 1.0, %v962_v34  ;;  %v2911_v20 = vadd.f32 %v875_v45, %v2627_v39  ;;  %413 = vst.msk [vmem:[#allocation3 + $0xf8] sm:$0xff] %vm381_vm1, %v380_v33 }
 0x226   : > { %1286 = vmatmul.bf16.gmra.mxu3 %v1150_v19  ;;  %v1346_v48 = vpack.c.bf16 %v1317_v44, %v1316_v40 }
 0x227   : > { %v2184_v50 = vpop.eup %2183  ;;  %v1061_v61 = vmul.f32 1.442695, %v1004_v46  ;;  %v1708_v53 = vsub.f32 %v1644_v47, %v1676_v43  ;;  %v1677_v56 = vmul.f32 %v2911_v20, %v2911_v20  ;;  %v473_v46 = vld [vmem:[#allocation3 + $0xd8] sm:$0xff] }
 0x228   : > { %v1739_v55 = vmul.f32 %v2184_v50, %v2184_v50  ;;  %1446 = vmatmul.bf16.gmra.mxu0 %v1346_v48  ;;  %v1099_v18 = vmul.f32 %v2184_v50, %v470_v14 }
 0x229   : > { %2185 = vpow2.f32 %v1061_v61  ;;  %v1247_v49 = vpop.f32.mrf.mxu3 }
 0x22a   : > { %v1771_v57 = vsub.f32 %v1707_v25, %v1739_v55  ;;  %v964_v51 = vpop.f32.mrf.mxu2  ;;  %v1248_v52 = vadd.f32 %v2829_v38, %v1247_v49  ;;  %v1131_v17 = vadd.f32 %v1099_v18, %v2896_v32 }
 0x22b   : > { %v965_v59 = vadd.f32 %v964_v51, %v2629_v41 }
 0x22c   : > { %v1802_v60 = vadd.f32 %v1801_v36, %v1771_v57  ;;  %v877_v62 = vpop.f32.mrf.mxu1  ;;  %v1318_v22 = vmax.f32 %v1248_v52, 0.0  ;;  %v472_v36 = vld [vmem:[#allocation3 + $0xd0] sm:$0xff] }
 0x22d   : > { %v1005_v63 = vmul.f32 0.5, %v965_v59  ;;  %v1645_v0 = vadd.f32 1.0, %v965_v59  ;;  %v878_v11 = vadd.f32 %v877_v62, %v2627_v39 }
 0x22f   : > { %v2186_v3 = vpop.eup %2185  ;;  %v1063_v4 = vmul.f32 1.442695, %v1005_v63  ;;  %v1709_v5 = vsub.f32 %v1645_v0, %v1677_v56  ;;  %v1678_v25 = vmul.f32 %v878_v11, %v878_v11 }
 0x230   : > { %v1740_v10 = vmul.f32 %v2186_v3, %v2186_v3  ;;  %v1100_v9 = vmul.f32 %v2186_v3, %v471_v7 }
 0x231   : > { %2187 = vpow2.f32 %v1063_v4  ;;  %v1249_v12 = vpop.f32.mrf.mxu3 }
 0x232   : > { %v1772_v13 = vsub.f32 %v1708_v53, %v1740_v10  ;;  %v1250_v15 = vadd.f32 %v2829_v38, %v1249_v12  ;;  %v966_v16 = vpop.f32.mrf.mxu2  ;;  %v1132_v2 = vadd.f32 %v1100_v9, %v873_v42 }
 0x233   : > { %v967_v58 = vadd.f32 %v966_v16, %v2629_v41 }
 0x234   : > { %v1803_v21 = vadd.f32 %v1802_v60, %v1772_v13  ;;  %v1319_v6 = vmax.f32 %v1250_v15, 0.0  ;;  %v880_v24 = vpop.f32.mrf.mxu1  ;;  %v1151_v1 = vpack.c.bf16 %v1132_v2, %v1131_v17  ;;  %v474_v2 = vld [vmem:[#allocation3 + $0xe0] sm:$0xff] }
 0x235   : > { %v1006_v26 = vmul.f32 0.5, %v967_v58  ;;  %v1646_v27 = vadd.f32 1.0, %v967_v58  ;;  %v2926_v32 = vadd.f32 %v880_v24, %v2627_v39  ;;  %v475_v24 = vld [vmem:[#allocation3 + $0xe8] sm:$0xff] }
 0x236   : > { %1291 = vmatmul.bf16.gmra.mxu3 %v1151_v1  ;;  %v1347_v28 = vpack.c.bf16 %v1319_v6, %v1318_v22 }
 0x237   : > { %v2188_v29 = vpop.eup %2187  ;;  %v1065_v30 = vmul.f32 1.442695, %v1006_v26  ;;  %v1710_v31 = vsub.f32 %v1646_v27, %v1678_v25  ;;  %v1679_v45 = vmul.f32 %v2926_v32, %v2926_v32 }
 0x238   : > { %v1741_v35 = vmul.f32 %v2188_v29, %v2188_v29  ;;  %1451 = vmatmul.bf16.gmra.mxu0 %v1347_v28  ;;  %v1101_v47 = vmul.f32 %v2188_v29, %v472_v36 }
 0x239   : > { %2189 = vpow2.f32 %v1065_v30  ;;  %v1252_v42 = vpop.f32.mrf.mxu3 }
 0x23a   : > { %v1773_v37 = vsub.f32 %v1709_v5, %v1741_v35  ;;  %v969_v23 = vpop.f32.mrf.mxu2  ;;  %v1253_v54 = vadd.f32 %v2829_v38, %v1252_v42  ;;  %v1133_v60 = vadd.f32 %v1101_v47, %v2911_v20 }
 0x23b   : > { %v970_v34 = vadd.f32 %v969_v23, %v2629_v41 }
 0x23c   : > { %v1804_v40 = vadd.f32 %v1803_v21, %v1773_v37  ;;  %v882_v44 = vpop.f32.mrf.mxu1  ;;  %v1320_v0 = vmax.f32 %v1253_v54, 0.0 }
 0x23d   : > { %v1007_v19 = vmul.f32 0.5, %v970_v34  ;;  %v1647_v43 = vadd.f32 1.0, %v970_v34  ;;  %v883_v49 = vadd.f32 %v882_v44, %v2627_v39 }
 0x23f   : > { %v2190_v48 = vpop.eup %2189  ;;  %v1067_v50 = vmul.f32 1.442695, %v1007_v19  ;;  %v1711_v61 = vsub.f32 %v1647_v43, %v1679_v45  ;;  %v1680_v4 = vmul.f32 %v883_v49, %v883_v49 }
 0x240   : > { %v1742_v53 = vmul.f32 %v2190_v48, %v2190_v48  ;;  %v1102_v55 = vmul.f32 %v2190_v48, %v473_v46 }
 0x241   : > { %2191 = vpow2.f32 %v1067_v50  ;;  %v1254_v57 = vpop.f32.mrf.mxu3 }
 0x242   : > { %v1774_v51 = vsub.f32 %v1710_v31, %v1742_v53  ;;  %v1255_v59 = vadd.f32 %v2829_v38, %v1254_v57  ;;  %v971_v14 = vpop.f32.mrf.mxu2  ;;  %v1134_v62 = vadd.f32 %v1102_v55, %v878_v11 }
 0x243   : > { %v972_v56 = vadd.f32 %v971_v14, %v2629_v41 }
 0x244   : > { %v1805_v63 = vadd.f32 %v1804_v40, %v1774_v51  ;;  %v1321_v7 = vmax.f32 %v1255_v59, 0.0  ;;  %v885_v18 = vpop.f32.mrf.mxu1  ;;  %v1152_v3 = vpack.c.bf16 %v1134_v62, %v1133_v60 }
 0x245   : > { %v1008_v5 = vmul.f32 0.5, %v972_v56  ;;  %v1648_v8 = vadd.f32 1.0, %v972_v56  ;;  %v886_v20 = vadd.f32 %v885_v18, %v2627_v39 }
 0x246   : > { %1296 = vmatmul.bf16.gmra.mxu3 %v1152_v3  ;;  %v1348_v10 = vpack.c.bf16 %v1321_v7, %v1320_v0 }
 0x247   : > { %v2192_v52 = vpop.eup %2191  ;;  %v1069_v9 = vmul.f32 1.442695, %v1008_v5  ;;  %v1712_v12 = vsub.f32 %v1648_v8, %v1680_v4  ;;  %v1681_v21 = vmul.f32 %v886_v20, %v886_v20 }
 0x248   : > { %v1743_v13 = vmul.f32 %v2192_v52, %v2192_v52  ;;  %1456 = vmatmul.bf16.gmra.mxu0 %v1348_v10  ;;  %v1103_v25 = vmul.f32 %v2192_v52, %v474_v2 }
 0x249   : > { %2193 = vpow2.f32 %v1069_v9  ;;  %v1257_v11 = vpop.f32.mrf.mxu3 }
 0x24a   : > { %v1775_v15 = vsub.f32 %v1711_v61, %v1743_v13  ;;  %v974_v16 = vpop.f32.mrf.mxu2  ;;  %v1258_v30 = vadd.f32 %v2829_v38, %v1257_v11  ;;  %v1135_v34 = vadd.f32 %v1103_v25, %v2926_v32 }
 0x24b   : > { %v975_v17 = vadd.f32 %v974_v16, %v2629_v41 }
 0x24c   : > { %v1806_v58 = vadd.f32 %v1805_v63, %v1775_v15  ;;  %v887_v1 = vpop.f32.mrf.mxu1  ;;  %v1322_v45 = vmax.f32 %v1258_v30, 0.0 }
 0x24d   : > { %v1009_v22 = vmul.f32 0.5, %v975_v17  ;;  %v1649_v6 = vadd.f32 1.0, %v975_v17  ;;  %v888_v33 = vadd.f32 %v887_v1, %v2627_v39 }
 0x24f   : > { %v2194_v26 = vpop.eup %2193  ;;  %v1071_v27 = vmul.f32 1.442695, %v1009_v22  ;;  %v1713_v28 = vsub.f32 %v1649_v6, %v1681_v21  ;;  %v1682_v46 = vmul.f32 %v888_v33, %v888_v33 }
 0x250   : > { %v1744_v29 = vmul.f32 %v2194_v26, %v2194_v26  ;;  %v1104_v31 = vmul.f32 %v2194_v26, %v475_v24  ;;  %v2954_v26 = vld [vmem:[%s3016_s3 + $0x4] ss:$0 sm:$0xff] }
 0x251   : > { %2195 = vpow2.f32 %v1071_v27  ;;  %v1259_v35 = vpop.f32.mrf.mxu3 }
 0x252   : > { %v1776_v42 = vsub.f32 %v1712_v12, %v1744_v29  ;;  %v1260_v37 = vadd.f32 %v2829_v38, %v1259_v35  ;;  %v976_v23 = vpop.f32.mrf.mxu2  ;;  %v1136_v36 = vadd.f32 %v1104_v31, %v883_v49  ;;  %v476_v49 = vld [vmem:[#allocation3 + $0xf0] sm:$0xff]  ;;  %v2199_v31 = vld [vmem:[#allocation2 + $0x8] sm:$0xff] }
 0x253   : > { %v977_v40 = vadd.f32 %v976_v23, %v2629_v41  ;;  %v477_v41 = vld [vmem:[#allocation3 + $0xf8] sm:$0xff] }
 0x254   : > { %v1807_v44 = vadd.f32 %v1806_v58, %v1776_v42  ;;  %v1323_v19 = vmax.f32 %v1260_v37, 0.0  ;;  %v1153_v43 = vpack.c.bf16 %v1136_v36, %v1135_v34  ;;  %v2200_v42 = vld [vmem:[#allocation2] sm:$0xff] }
 0x255   : > { %v1010_v47 = vmul.f32 0.5, %v977_v40  ;;  %v1650_v48 = vadd.f32 1.0, %v977_v40 }
 0x256   : > { %1301 = vmatmul.bf16.gmra.mxu3 %v1153_v43  ;;  %v1349_v50 = vpack.c.bf16 %v1323_v19, %v1322_v45  ;;  %v2201_v43 = vld [vmem:[#allocation2 + $0x10] sm:$0xff] }
 0x257   : > { %v2196_v39 = vpop.eup %2195  ;;  %v1073_v61 = vmul.f32 1.442695, %v1010_v47  ;;  %v1714_v53 = vsub.f32 %v1650_v48, %v1682_v46 }
 0x258   : > { %v1745_v54 = vmul.f32 %v2196_v39, %v2196_v39  ;;  %1461 = vmatmul.bf16.gmra.mxu0 %v1349_v50  ;;  %v1105_v51 = vmul.f32 %v2196_v39, %v476_v49 }
 0x259   : > { %2197 = vpow2.f32 %v1073_v61  ;;  %v1262_v55 = vpop.f32.mrf.mxu3 }
 0x25a   : > { %v1777_v32 = vsub.f32 %v1713_v28, %v1745_v54  ;;  %v1263_v60 = vadd.f32 %v2829_v38, %v1262_v55  ;;  %v1137_v7 = vadd.f32 %v1105_v51, %v886_v20  ;;  %v2202_v55 = vld [vmem:[#allocation2 + $0x18] sm:$0xff] }
 0x25c   : > { %v1808_v57 = vadd.f32 %v1807_v44, %v1777_v32  ;;  %v1324_v4 = vmax.f32 %v1263_v60, 0.0 }
 0x25f   : > { %v2198_v59 = vpop.eup %2197 }
 0x260   : > { %v1746_v14 = vmul.f32 %v2198_v59, %v2198_v59  ;;  %v1106_v62 = vmul.f32 %v2198_v59, %v477_v41 }
 0x261   : > { %v1264_v56 = vpop.f32.mrf.mxu3 }
 0x262   : > { %v1778_v63 = vsub.f32 %v1714_v53, %v1746_v14  ;;  %v1265_v0 = vadd.f32 %v2829_v38, %v1264_v56  ;;  %v1138_v18 = vadd.f32 %v1106_v62, %v888_v33 }
 0x264   : > { %v2945_v3 = vadd.f32 %v1808_v57, %v1778_v63  ;;  %v1325_v5 = vmax.f32 %v1265_v0, 0.0  ;;  %v1154_v8 = vpack.c.bf16 %v1138_v18, %v1137_v7  ;;  %v2203_v63 = vld [vmem:[#allocation2 + $0x20] sm:$0xff] }
 0x266   : > { %1306 = vmatmul.bf16.gmra.mxu3 %v1154_v8  ;;  %v1350_v10 = vpack.c.bf16 %v1325_v5, %v1324_v4 }
 0x267   : > { %v1437_v58 = vpop.f32.mrf.mxu0 }
 0x268   : > { %1466 = vmatmul.bf16.gmra.mxu0 %v1350_v10  ;;  %v1438_v28 = vadd.f32 %v2954_v26, %v1437_v58 }
 0x269   : > { %v1267_v52 = vpop.f32.mrf.mxu3 }
 0x26a   : > { %v1268_v9 = vadd.f32 %v2829_v38, %v1267_v52  ;;  %v1517_v37 = vsub.f32 %v2200_v42, %v1438_v28  ;;  %v2204_v52 = vld [vmem:[#allocation2 + $0x28] sm:$0xff] }
 0x26c   : > { %v1326_v11 = vmax.f32 %v1268_v9, 0.0  ;;  %v1549_v19 = vmul.f32 %v1517_v37, %v1517_v37 }
 0x26f   : > { %v1439_v25 = vpop.f32.mrf.mxu0 }
 0x270   : > { %v1440_v27 = vadd.f32 %v2954_v26, %v1439_v25 }
 0x271   : > { %v1269_v12 = vpop.f32.mrf.mxu3 }
 0x272   : > { %v1270_v13 = vadd.f32 %v2829_v38, %v1269_v12  ;;  %v1518_v33 = vsub.f32 %v2199_v31, %v1440_v27 }
 0x274   : > { %v1327_v15 = vmax.f32 %v1270_v13, 0.0  ;;  %v1550_v40 = vmul.f32 %v1518_v33, %v1518_v33 }
 0x276   : > { %v1351_v16 = vpack.c.bf16 %v1327_v15, %v1326_v11  ;;  %v1581_v48 = vadd.f32 %v1550_v40, %v1549_v19 }
 0x278   : > { %1471 = vmatmul.bf16.gmra.mxu0 %v1351_v16 }
 0x279   : > { %v1272_v20 = vpop.f32.mrf.mxu3 }
 0x27a   : > { %v1273_v17 = vadd.f32 %v2829_v38, %v1272_v20 }
 0x27c   : > { %v1328_v22 = vmax.f32 %v1273_v17, 0.0 }
 0x281   : > { %v1274_v2 = vpop.f32.mrf.mxu3 }
 0x282   : > { %v1275_v21 = vadd.f32 %v2829_v38, %v1274_v2 }
 0x284   : > { %v1329_v6 = vmax.f32 %v1275_v21, 0.0  ;;  %v2205_v21 = vld [vmem:[#allocation2 + $0x30] sm:$0xff] }
 0x286   : > { %v1352_v24 = vpack.c.bf16 %v1329_v6, %v1328_v22 }
 0x288   : > { %1476 = vmatmul.bf16.gmra.mxu0 %v1352_v24 }
 0x289   : > { %v1277_v1 = vpop.f32.mrf.mxu3 }
 0x28a   : > { %v1278_v29 = vadd.f32 %v2829_v38, %v1277_v1 }
 0x28c   : > { %v1330_v23 = vmax.f32 %v1278_v29, 0.0  ;;  %v2206_v29 = vld [vmem:[#allocation2 + $0x38] sm:$0xff] }
 0x291   : > { %v1279_v30 = vpop.f32.mrf.mxu3 }
 0x292   : > { %v1280_v35 = vadd.f32 %v2829_v38, %v1279_v30 }
 0x294   : > { %v1331_v34 = vmax.f32 %v1280_v35, 0.0 }
 0x295   : > { %v1442_v36 = vpop.f32.mrf.mxu0 }
 0x296   : > { %v1353_v44 = vpack.c.bf16 %v1331_v34, %v1330_v23  ;;  %v1443_v45 = vadd.f32 %v2954_v26, %v1442_v36 }
 0x298   : > { %v1519_v46 = vsub.f32 %v2201_v43, %v1443_v45  ;;  %1481 = vmatmul.bf16.gmra.mxu0 %v1353_v44  ;;  %v2207_v44 = vld [vmem:[#allocation2 + $0x40] sm:$0xff] }
 0x299   : > { %v1282_v47 = vpop.f32.mrf.mxu3 }
 0x29a   : > { %v1551_v50 = vmul.f32 %v1519_v46, %v1519_v46  ;;  %v1283_v54 = vadd.f32 %v2829_v38, %v1282_v47 }
 0x29c   : > { %v1582_v39 = vadd.f32 %v1581_v48, %v1551_v50  ;;  %v1332_v51 = vmax.f32 %v1283_v54, 0.0 }
 0x29d   : > { %v1444_v61 = vpop.f32.mrf.mxu0 }
 0x29e   : > { %v1445_v53 = vadd.f32 %v2954_v26, %v1444_v61 }
 0x2a0   : > { %v1520_v32 = vsub.f32 %v2202_v55, %v1445_v53 }
 0x2a1   : > { %v1284_v49 = vpop.f32.mrf.mxu3 }
 0x2a2   : > { %v1552_v57 = vmul.f32 %v1520_v32, %v1520_v32  ;;  %v1285_v41 = vadd.f32 %v2829_v38, %v1284_v49 }
 0x2a4   : > { %v1583_v59 = vadd.f32 %v1582_v39, %v1552_v57  ;;  %v1333_v14 = vmax.f32 %v1285_v41, 0.0  ;;  %v2208_v39 = vld [vmem:[#allocation2 + $0x48] sm:$0xff] }
 0x2a5   : > { %v1447_v60 = vpop.f32.mrf.mxu0 }
 0x2a6   : > { %v1354_v62 = vpack.c.bf16 %v1333_v14, %v1332_v51  ;;  %v1448_v56 = vadd.f32 %v2954_v26, %v1447_v60  ;;  %v2209_v14 = vld [vmem:[#allocation2 + $0x50] sm:$0xff] }
 0x2a8   : > { %v1521_v0 = vsub.f32 %v2203_v63, %v1448_v56  ;;  %1486 = vmatmul.bf16.gmra.mxu0 %v1354_v62 }
 0x2a9   : > { %v1287_v7 = vpop.f32.mrf.mxu3 }
 0x2aa   : > { %v1553_v18 = vmul.f32 %v1521_v0, %v1521_v0  ;;  %v1288_v10 = vadd.f32 %v2829_v38, %v1287_v7 }
 0x2ac   : > { %v1584_v4 = vadd.f32 %v1583_v59, %v1553_v18  ;;  %v1334_v15 = vmax.f32 %v1288_v10, 0.0 }
 0x2ad   : > { %v1449_v5 = vpop.f32.mrf.mxu0 }
 0x2ae   : > { %v1450_v8 = vadd.f32 %v2954_v26, %v1449_v5 }
 0x2b0   : > { %v1522_v9 = vsub.f32 %v2204_v52, %v1450_v8 }
 0x2b1   : > { %v1289_v12 = vpop.f32.mrf.mxu3 }
 0x2b2   : > { %v1554_v13 = vmul.f32 %v1522_v9, %v1522_v9  ;;  %v1290_v11 = vadd.f32 %v2829_v38, %v1289_v12 }
 0x2b4   : > { %v1585_v16 = vadd.f32 %v1584_v4, %v1554_v13  ;;  %v1335_v20 = vmax.f32 %v1290_v11, 0.0  ;;  %v2210_v4 = vld [vmem:[#allocation2 + $0x58] sm:$0xff] }
 0x2b5   : > { %v1452_v17 = vpop.f32.mrf.mxu0 }
 0x2b6   : > { %v1355_v2 = vpack.c.bf16 %v1335_v20, %v1334_v15  ;;  %v1453_v58 = vadd.f32 %v2954_v26, %v1452_v17  ;;  %v2211_v20 = vld [vmem:[#allocation2 + $0x60] sm:$0xff] }
 0x2b8   : > { %v1523_v22 = vsub.f32 %v2205_v21, %v1453_v58  ;;  %1491 = vmatmul.bf16.gmra.mxu0 %v1355_v2 }
 0x2b9   : > { %v1292_v6 = vpop.f32.mrf.mxu3 }
 0x2ba   : > { %v1555_v24 = vmul.f32 %v1523_v22, %v1523_v22  ;;  %v1293_v28 = vadd.f32 %v2829_v38, %v1292_v6 }
 0x2bc   : > { %v1586_v1 = vadd.f32 %v1585_v16, %v1555_v24  ;;  %v1336_v42 = vmax.f32 %v1293_v28, 0.0 }
 0x2bd   : > { %v1454_v25 = vpop.f32.mrf.mxu0 }
 0x2be   : > { %v1455_v27 = vadd.f32 %v2954_v26, %v1454_v25 }
 0x2c0   : > { %v1524_v30 = vsub.f32 %v2206_v29, %v1455_v27 }
 0x2c1   : > { %v1294_v31 = vpop.f32.mrf.mxu3 }
 0x2c2   : > { %v1556_v33 = vmul.f32 %v1524_v30, %v1524_v30  ;;  %v1295_v35 = vadd.f32 %v2829_v38, %v1294_v31 }
 0x2c4   : > { %v1587_v37 = vadd.f32 %v1586_v1, %v1556_v33  ;;  %v1337_v23 = vmax.f32 %v1295_v35, 0.0  ;;  %v2213_v1 = vld [vmem:[#allocation2 + $0x68] sm:$0xff] }
 0x2c5   : > { %v1457_v34 = vpop.f32.mrf.mxu0 }
 0x2c6   : > { %v1356_v36 = vpack.c.bf16 %v1337_v23, %v1336_v42  ;;  %v1458_v40 = vadd.f32 %v2954_v26, %v1457_v34  ;;  %v2214_v23 = vld [vmem:[#allocation2 + $0x70] sm:$0xff] }
 0x2c8   : > { %v1525_v45 = vsub.f32 %v2207_v44, %v1458_v40  ;;  %1496 = vmatmul.bf16.gmra.mxu0 %v1356_v36 }
 0x2c9   : > { %v1297_v19 = vpop.f32.mrf.mxu3 }
 0x2ca   : > { %v1557_v43 = vmul.f32 %v1525_v45, %v1525_v45  ;;  %v1298_v50 = vadd.f32 %v2829_v38, %v1297_v19  ;;  %v2215_v19 = vld [vmem:[#allocation2 + $0x78] sm:$0xff] }
 0x2cc   : > { %v1588_v46 = vadd.f32 %v1587_v37, %v1557_v43  ;;  %v1338_v32 = vmax.f32 %v1298_v50, 0.0 }
 0x2cd   : > { %v1459_v47 = vpop.f32.mrf.mxu0 }
 0x2ce   : > { %v1460_v48 = vadd.f32 %v2954_v26, %v1459_v47 }
 0x2d0   : > { %v1526_v61 = vsub.f32 %v2208_v39, %v1460_v48  ;;  %v2216_v39 = vld [vmem:[#allocation2 + $0x80] sm:$0xff] }
 0x2d1   : > { %v1299_v53 = vpop.f32.mrf.mxu3 }
 0x2d2   : > { %v1558_v54 = vmul.f32 %v1526_v61, %v1526_v61  ;;  %v1300_v55 = vadd.f32 %v2829_v38, %v1299_v53 }
 0x2d4   : > { %v1589_v49 = vadd.f32 %v1588_v46, %v1558_v54  ;;  %v1339_v57 = vmax.f32 %v1300_v55, 0.0 }
 0x2d5   : > { %v1462_v41 = vpop.f32.mrf.mxu0 }
 0x2d6   : > { %v1357_v51 = vpack.c.bf16 %v1339_v57, %v1338_v32  ;;  %v1463_v59 = vadd.f32 %v2954_v26, %v1462_v41 }
 0x2d8   : > { %v1527_v60 = vsub.f32 %v2209_v14, %v1463_v59  ;;  %1501 = vmatmul.bf16.gmra.mxu0 %v1357_v51 }
 0x2d9   : > { %v1302_v62 = vpop.f32.mrf.mxu3 }
 0x2da   : > { %v1559_v56 = vmul.f32 %v1527_v60, %v1527_v60  ;;  %v1303_v18 = vadd.f32 %v2829_v38, %v1302_v62  ;;  %v2218_v60 = vld [vmem:[#allocation2 + $0x90] sm:$0xff] }
 0x2dc   : > { %v1590_v63 = vadd.f32 %v1589_v49, %v1559_v56  ;;  %v1340_v9 = vmax.f32 %v1303_v18, 0.0  ;;  %v2217_v49 = vld [vmem:[#allocation2 + $0x88] sm:$0xff]  ;;  %v2219_v18 = vld [vmem:[#allocation2 + $0x98] sm:$0xff] }
 0x2dd   : > { %v1464_v0 = vpop.f32.mrf.mxu0 }
 0x2de   : > { %v1465_v7 = vadd.f32 %v2954_v26, %v1464_v0 }
 0x2e0   : > { %v1528_v5 = vsub.f32 %v2210_v4, %v1465_v7 }
 0x2e1   : > { %v1304_v8 = vpop.f32.mrf.mxu3 }
 0x2e2   : > { %v1560_v10 = vmul.f32 %v1528_v5, %v1528_v5  ;;  %v1305_v52 = vadd.f32 %v2829_v38, %v1304_v8  ;;  %v2212_v38 = vld [vmem:[%s3016_s3 + $0x3] ss:$0 sm:$0xff] }
 0x2e4   : > { %v1591_v12 = vadd.f32 %v1590_v63, %v1560_v10  ;;  %v1341_v13 = vmax.f32 %v1305_v52, 0.0 }
 0x2e5   : > { %v1467_v11 = vpop.f32.mrf.mxu0 }
 0x2e6   : > { %v1358_v15 = vpack.c.bf16 %v1341_v13, %v1340_v9  ;;  %v1468_v16 = vadd.f32 %v2954_v26, %v1467_v11  ;;  %v2220_v9 = vld [vmem:[#allocation2 + $0xa0] sm:$0xff] }
 0x2e8   : > { %v1529_v17 = vsub.f32 %v2211_v20, %v1468_v16  ;;  %1506 = vmatmul.bf16.gmra.mxu0 %v1358_v15 }
 0x2e9   : > { %v1307_v2 = vpop.f32.mrf.mxu3 }
 0x2ea   : > { %v1561_v58 = vmul.f32 %v1529_v17, %v1529_v17  ;;  %v1308_v24 = vadd.f32 %v2212_v38, %v1307_v2 }
 0x2ec   : > { %v1592_v21 = vadd.f32 %v1591_v12, %v1561_v58  ;;  %v1342_v30 = vmax.f32 %v1308_v24, 0.0  ;;  %v2221_v24 = vld [vmem:[#allocation2 + $0xa8] sm:$0xff] }
 0x2ed   : > { %v1469_v22 = vpop.f32.mrf.mxu0 }
 0x2ee   : > { %v1470_v6 = vadd.f32 %v2954_v26, %v1469_v22 }
 0x2f0   : > { %v1530_v25 = vsub.f32 %v2213_v1, %v1470_v6 }
 0x2f1   : > { %v1309_v27 = vpop.f32.mrf.mxu3 }
 0x2f2   : > { %v1562_v28 = vmul.f32 %v1530_v25, %v1530_v25  ;;  %v1310_v29 = vadd.f32 %v2212_v38, %v1309_v27  ;;  %v2222_v27 = vld [vmem:[#allocation2 + $0xb0] sm:$0xff] }
 0x2f4   : > { %v1593_v31 = vadd.f32 %v1592_v21, %v1562_v28  ;;  %v1343_v33 = vmax.f32 %v1310_v29, 0.0 }
 0x2f5   : > { %v1472_v35 = vpop.f32.mrf.mxu0 }
 0x2f6   : > { %v1359_v42 = vpack.c.bf16 %v1343_v33, %v1342_v30  ;;  %v1473_v37 = vadd.f32 %v2954_v26, %v1472_v35 }
 0x2f8   : > { %v1531_v34 = vsub.f32 %v2214_v23, %v1473_v37  ;;  %1511 = vmatmul.bf16.gmra.mxu0 %v1359_v42  ;;  %v2224_v23 = vld [vmem:[#allocation2 + $0xc0] sm:$0xff] }
 0x2fa   : > { %v1563_v36 = vmul.f32 %v1531_v34, %v1531_v34 }
 0x2fc   : > { %v1594_v40 = vadd.f32 %v1593_v31, %v1563_v36  ;;  %v2223_v31 = vld [vmem:[#allocation2 + $0xb8] sm:$0xff] }
 0x2fd   : > { %v1474_v44 = vpop.f32.mrf.mxu0 }
 0x2fe   : > { %v1475_v45 = vadd.f32 %v2954_v26, %v1474_v44 }
 0x300   : > { %v1532_v43 = vsub.f32 %v2215_v19, %v1475_v45  ;;  %v2225_v45 = vld [vmem:[#allocation2 + $0xc8] sm:$0xff] }
 0x302   : > { %v1564_v46 = vmul.f32 %v1532_v43, %v1532_v43 }
 0x304   : > { %v1595_v47 = vadd.f32 %v1594_v40, %v1564_v46 }
 0x305   : > { %v1477_v48 = vpop.f32.mrf.mxu0 }
 0x306   : > { %v1478_v50 = vadd.f32 %v2954_v26, %v1477_v48  ;;  %v2226_v48 = vld [vmem:[#allocation2 + $0xd0] sm:$0xff] }
 0x308   : > { %v1533_v61 = vsub.f32 %v2216_v39, %v1478_v50 }
 0x30a   : > { %v1565_v53 = vmul.f32 %v1533_v61, %v1533_v61 }
 0x30c   : > { %v1596_v54 = vadd.f32 %v1595_v47, %v1565_v53 }
 0x30d   : > { %v1479_v55 = vpop.f32.mrf.mxu0 }
 0x30e   : > { %v1480_v32 = vadd.f32 %v2954_v26, %v1479_v55 }
 0x310   : > { %v1534_v57 = vsub.f32 %v2217_v49, %v1480_v32 }
 0x312   : > { %v1566_v41 = vmul.f32 %v1534_v57, %v1534_v57 }
 0x314   : > { %v1597_v51 = vadd.f32 %v1596_v54, %v1566_v41  ;;  %v2227_v54 = vld [vmem:[#allocation2 + $0xd8] sm:$0xff] }
 0x315   : > { %v1482_v59 = vpop.f32.mrf.mxu0 }
 0x316   : > { %v1483_v14 = vadd.f32 %v2954_v26, %v1482_v59 }
 0x318   : > { %v1535_v62 = vsub.f32 %v2218_v60, %v1483_v14 }
 0x31a   : > { %v1567_v56 = vmul.f32 %v1535_v62, %v1535_v62 }
 0x31c   : > { %v1598_v63 = vadd.f32 %v1597_v51, %v1567_v56  ;;  %v2228_v51 = vld [vmem:[#allocation2 + $0xe0] sm:$0xff]  ;;  %v2229_v56 = vld [vmem:[#allocation2 + $0xe8] sm:$0xff] }
 0x31d   : > { %v1484_v0 = vpop.f32.mrf.mxu0 }
 0x31e   : > { %v1485_v7 = vadd.f32 %v2954_v26, %v1484_v0  ;;  %v1810_v0 = vrot.slane %v2945_v3, 4 }
 0x320   : > { %v1536_v4 = vsub.f32 %v2219_v18, %v1485_v7 }
 0x322   : > { %v1568_v5 = vmul.f32 %v1536_v4, %v1536_v4  ;;  %v2230_v4 = vld [vmem:[#allocation2 + $0xf0] sm:$0xff] }
 0x324   : > { %v1599_v8 = vadd.f32 %v1598_v63, %v1568_v5 }
 0x325   : > { %v1487_v10 = vpop.f32.mrf.mxu0 }
 0x326   : > { %v1488_v52 = vadd.f32 %v2954_v26, %v1487_v10 }
 0x328   : > { %v1537_v12 = vsub.f32 %v2220_v9, %v1488_v52  ;;  %v1811_v9 = vadd.f32 %v1810_v0, %v2945_v3 }
 0x32a   : > { %v1569_v13 = vmul.f32 %v1537_v12, %v1537_v12 }
 0x32c   : > { %v1600_v11 = vadd.f32 %v1599_v8, %v1569_v13 }
 0x32d   : > { %v1489_v15 = vpop.f32.mrf.mxu0 }
 0x32e   : > { %v1490_v22 = vadd.f32 %v2954_v26, %v1489_v15 }
 0x330   : > { %v1538_v1 = vsub.f32 %v2221_v24, %v1490_v22  ;;  %v1817_v24 = vlaneseq }
 0x332   : > { %v1570_v30 = vmul.f32 %v1538_v1, %v1538_v1 }
 0x334   : > { %v1601_v40 = vadd.f32 %v1600_v11, %v1570_v30 }
 0x335   : > { %v1492_v16 = vpop.f32.mrf.mxu0 }
 0x336   : > { %v1493_v38 = vadd.f32 %v2954_v26, %v1492_v16  ;;  %v2231_v16 = vld [vmem:[#allocation2 + $0xf8] sm:$0xff] }
 0x338   : > { %v1539_v28 = vsub.f32 %v2222_v27, %v1493_v38  ;;  %v1818_v27 = vshrl.u32 %v1817_v24, 7 }
 0x33a   : > { %v1571_v37 = vmul.f32 %v1539_v28, %v1539_v28  ;;  %vm1819_vm2 = vcmp.eq.s32.totalorder %v1818_v27, 0 }
 0x33c   : > { %v1602_v46 = vadd.f32 %v1601_v40, %v1571_v37 }
 0x33d   : > { %v1494_v20 = vpop.f32.mrf.mxu0 }
 0x33e   : > { %v1495_v25 = vadd.f32 %v2954_v26, %v1494_v20 }
 0x340   : > { %v1540_v33 = vsub.f32 %v2223_v31, %v1495_v25 }
 0x342   : > { %v1572_v44 = vmul.f32 %v1540_v33, %v1540_v33 }
 0x344   : > { %v1603_v61 = vadd.f32 %v1602_v46, %v1572_v44 }
 0x345   : > { %v1497_v17 = vpop.f32.mrf.mxu0 }
 0x346   : > { %v1498_v29 = vadd.f32 %v2954_v26, %v1497_v17  ;;  %v1812_v17 = vrot.slane %v1811_v9, 2 }
 0x348   : > { %v1541_v34 = vsub.f32 %v2224_v23, %v1498_v29  ;;  %v1813_v22 = vadd.f32 %v1812_v17, %v1811_v9 }
 0x34a   : > { %v1573_v47 = vmul.f32 %v1541_v34, %v1541_v34  ;;  %v1814_v1 = vrot.slane %v1813_v22, 1 }
 0x34c   : > { %v1604_v57 = vadd.f32 %v1603_v61, %v1573_v47  ;;  %v1815_v28 = vadd.f32 %v1814_v1, %v1813_v22 }
 0x34d   : > { %v1499_v2 = vpop.f32.mrf.mxu0 }
 0x34e   : > { %v1500_v35 = vadd.f32 %v2954_v26, %v1499_v2  ;;  %v1816_v30 = vmul.f32 0.5, %v1815_v28 }
 0x350   : > { %v1542_v19 = vsub.f32 %v2225_v45, %v1500_v35 }
 0x352   : > { %v1574_v53 = vmul.f32 %v1542_v19, %v1542_v19 }
 0x354   : > { %v1605_v60 = vadd.f32 %v1604_v57, %v1574_v53 }
 0x355   : > { %v1502_v58 = vpop.f32.mrf.mxu0 }
 0x356   : > { %v1503_v36 = vadd.f32 %v2954_v26, %v1502_v58 }
 0x358   : > { %v1543_v50 = vsub.f32 %v2226_v48, %v1503_v36 }
 0x35a   : > { %v1575_v41 = vmul.f32 %v1543_v50, %v1543_v50 }
 0x35c   : > { %v1606_v7 = vadd.f32 %v1605_v60, %v1575_v41 }
 0x35d   : > { %v1504_v21 = vpop.f32.mrf.mxu0 }
 0x35e   : > { %v1505_v43 = vadd.f32 %v2954_v26, %v1504_v21 }
 0x360   : > { %v1544_v55 = vsub.f32 %v2227_v54, %v1505_v43 }
 0x362   : > { %v1576_v62 = vmul.f32 %v1544_v55, %v1544_v55 }
 0x364   : > { %v1607_v8 = vadd.f32 %v1606_v7, %v1576_v62 }
 0x365   : > { %v1507_v6 = vpop.f32.mrf.mxu0 }
 0x366   : > { %v1508_v39 = vadd.f32 %v2954_v26, %v1507_v6 }
 0x368   : > { %v1545_v59 = vsub.f32 %v2228_v51, %v1508_v39 }
 0x36a   : > { %v1577_v18 = vmul.f32 %v1545_v59, %v1545_v59 }
 0x36c   : > { %v1608_v12 = vadd.f32 %v1607_v8, %v1577_v18 }
 0x36d   : > { %v1509_v42 = vpop.f32.mrf.mxu0 }
 0x36e   : > { %v1510_v32 = vadd.f32 %v2954_v26, %v1509_v42 }
 0x370   : > { %v1546_v63 = vsub.f32 %v2229_v56, %v1510_v32 }
 0x372   : > { %v1578_v10 = vmul.f32 %v1546_v63, %v1546_v63 }
 0x374   : > { %v1609_v15 = vadd.f32 %v1608_v12, %v1578_v10 }
 0x375   : > { %v1512_v49 = vpop.f32.mrf.mxu0 }
 0x376   : > { %v1513_v14 = vadd.f32 %v2954_v26, %v1512_v49 }
 0x378   : > { %v1547_v5 = vsub.f32 %v2230_v4, %v1513_v14 }
 0x37a   : > { %v1579_v13 = vmul.f32 %v1547_v5, %v1547_v5 }
 0x37c   : > { %v1610_v2 = vadd.f32 %v1609_v15, %v1579_v13 }
 0x37d   : > { %v1514_v52 = vpop.f32.mrf.mxu0 }
 0x37e   : > { %v1515_v11 = vadd.f32 %v2954_v26, %v1514_v52 }
 0x380   : > { %v1548_v20 = vsub.f32 %v2231_v16, %v1515_v11 }
 0x382   : > { %v1580_v58 = vmul.f32 %v1548_v20, %v1548_v20 }
 0x384   : > { %v1611_v21 = vadd.f32 %v1610_v2, %v1580_v58 }
 0x386   : > { %v1612_v6 = vrot.slane %v1611_v21, 4 }
 0x388   : > { %v1613_v38 = vadd.f32 %v1612_v6, %v1611_v21 }
 0x38a   : > { %v1614_v25 = vrot.slane %v1613_v38, 2 }
 0x38c   : > { %v1615_v3 = vadd.f32 %v1614_v25, %v1613_v38 }
 0x38e   : > { %v1616_v29 = vrot.slane %v1615_v3, 1 }
 0x390   : > { %v1617_v26 = vadd.f32 %v1616_v29, %v1615_v3 }
 0x392   : > { %v1618_v31 = vmul.f32 -0.5, %v1617_v26 }
 0x394   : > { %v1820_v33 = vsel %vm1819_vm2, %v1618_v31, %v1816_v30 }
 0x395   : > { %1821 = vst [vmem:[%s219_s18] sm:$0x3] %v1820_v33 }
 0x396 PF: > { %s14_s15 = sadd.s32 1, %s2238_s15  }
 0x397   : > { %p11_p5 = scmp.ge.s32.totalorder %s14_s15, 4  }
 0x399   :  { %13 = sbr.rel (!%p11_p5) target bundleno = 1 (0x1), region = 69 }

</bundles_post_ra>
